<compile_context>
chip_gen: v7x
topology: tpu7x:2x2x1
jax: 0.10.0
libtpu: 0.0.40
codegen_flags: <defaults>
</compile_context>

<pallas_src>
import jax
import jax.numpy as jnp
from jax.experimental import pallas as pl
from jax.experimental.pallas import tpu as pltpu

LANE = 128      # vreg lane width: feature dims padded to multiples of this
SUBLANE = 8     # f32 sublane width: batch tile must be a multiple of this


def _round_up(x, m):
    return ((x + m - 1) // m) * m


def _pad2d(a, rows, cols):
    r, c = a.shape
    return jnp.pad(a, ((0, rows - r), (0, cols - c)))


def mlp_kernel(x_ref, w1_ref, b1_ref, w2_ref, b2_ref, w3_ref, b3_ref, o_ref):
    """One batch tile: 3 MXU matmuls (bf16 in, f32 acc) + f32 VPU/EUP epilogue."""
    # fc1 -> ReLU
    h = jnp.dot(x_ref[...], w1_ref[...], preferred_element_type=jnp.float32)
    h = jnp.maximum(h + b1_ref[...], 0.0)
    # fc2 -> ReLU
    h = jnp.dot(h.astype(w2_ref.dtype), w2_ref[...],
                preferred_element_type=jnp.float32)
    h = jnp.maximum(h + b2_ref[...], 0.0)
    # fc3 -> sigmoid (epilogue kept in f32)
    h = jnp.dot(h.astype(w3_ref.dtype), w3_ref[...],
                preferred_element_type=jnp.float32)
    o_ref[...] = jax.nn.sigmoid(h + b3_ref[...]).astype(o_ref.dtype)


def _build_call(tile_b, n_tiles, in_p, hid_p, out_p, compute_dtype,
                single_buffer_weights):
    """Construct the pallas_call for the padded problem."""
    wt_bytes = jnp.dtype(compute_dtype).itemsize

    def resident(shape):
        # Weights/biases: same block every grid step (constant index_map).
        idx = lambda i: (0, 0)
        if single_buffer_weights and hasattr(pl, "Buffered"):
            # No need for a 2nd pipeline buffer -> halves resident weight VMEM.
            return pl.BlockSpec(shape, idx, pipeline_mode=pl.Buffered(1))
        return pl.BlockSpec(shape, idx)

    in_specs = [
        pl.BlockSpec((tile_b, in_p), lambda i: (i, 0)),   # x (tiled over batch)
        resident((in_p, hid_p)),                          # w1
        resident((1, hid_p)),                             # b1
        resident((hid_p, hid_p)),                         # w2
        resident((1, hid_p)),                             # b2
        resident((hid_p, out_p)),                         # w3
        resident((1, out_p)),                             # b3
    ]
    out_specs = pl.BlockSpec((tile_b, out_p), lambda i: (i, 0))

    # --- explicit VMEM budget (so v7x's smaller 64 MiB VMEM is respected) ---
    weight_buf = 1 if single_buffer_weights else 2
    weight_bytes = (in_p * hid_p + hid_p * hid_p + hid_p * out_p) * wt_bytes
    bias_bytes = (hid_p + hid_p + out_p) * 4
    io_bytes = 2 * tile_b * in_p * wt_bytes + 2 * tile_b * out_p * 4  # dbl-buffered x / out
    act_bytes = 2 * tile_b * hid_p * 4                                # live h1/h2 (f32)
    vmem_limit = int(1.5 * (weight_buf * (weight_bytes + bias_bytes)
                            + io_bytes + act_bytes)) + (4 << 20)
    vmem_limit = min(max(vmem_limit, 16 << 20), 48 << 20)

    b_total = tile_b * n_tiles
    cost = pl.CostEstimate(
        flops=2 * b_total * (in_p * hid_p + hid_p * hid_p + hid_p * out_p),
        transcendentals=b_total * out_p,                  # sigmoid
        bytes_accessed=(b_total * in_p * wt_bytes + weight_bytes + bias_bytes
                        + b_total * out_p * 4),
    )

    return pl.pallas_call(
        mlp_kernel,
        out_shape=jax.ShapeDtypeStruct((b_total, out_p), jnp.float32),
        grid_spec=pltpu.PrefetchScalarGridSpec(
            num_scalar_prefetch=0,
            grid=(n_tiles,),
            in_specs=in_specs,
            out_specs=out_specs,
        ),
        compiler_params=pltpu.CompilerParams(
            # batch tiles are independent -> shardable across v7x's 2 TCs
            dimension_semantics=("parallel",),
            vmem_limit_bytes=vmem_limit,
        ),
        cost_estimate=cost,
    )


def mlp_forward(x, params, *, tile_b=512, compute_dtype=jnp.bfloat16):
    """x: [B, input_dim] f32. params: w1,b1,w2,b2,w3,b3 with weights [in, out],
    biases [1, out].  Returns f32 [B, output_dim]."""
    B, in_dim = x.shape
    hid = params["w1"].shape[1]
    out_dim = params["w3"].shape[1]

    # Lane-dense padding of feature dims.
    in_p = _round_up(in_dim, LANE)
    hid_p = _round_up(hid, LANE)
    out_p = _round_up(out_dim, LANE)

    # Batch tiling (tile_b multiple of 8; batch padded to a whole number of tiles).
    tile_b = max(SUBLANE, _round_up(min(tile_b, _round_up(B, SUBLANE)), SUBLANE))
    B_p = _round_up(B, tile_b)
    n_tiles = B_p // tile_b
    assert tile_b % SUBLANE == 0 and B_p % tile_b == 0
    assert in_p % LANE == 0 and hid_p % LANE == 0 and out_p % LANE == 0

    # Pad + cast operands (zero padding is exact through matmul/ReLU; padded
    # output rows/cols are sliced off below).
    x_p = _pad2d(x, B_p, in_p).astype(compute_dtype)
    w1 = _pad2d(params["w1"], in_p, hid_p).astype(compute_dtype)
    w2 = _pad2d(params["w2"], hid_p, hid_p).astype(compute_dtype)
    w3 = _pad2d(params["w3"], hid_p, out_p).astype(compute_dtype)
    b1 = _pad2d(params["b1"], 1, hid_p).astype(jnp.float32)
    b2 = _pad2d(params["b2"], 1, hid_p).astype(jnp.float32)
    b3 = _pad2d(params["b3"], 1, out_p).astype(jnp.float32)
    args = (x_p, w1, b1, w2, b2, w3, b3)

    try:
        out = _build_call(tile_b, n_tiles, in_p, hid_p, out_p, compute_dtype,
                          single_buffer_weights=True)(*args)
        out = jax.block_until_ready(out)
    except Exception:
        # Fallback if this jax build rejects single-buffered (pl.Buffered(1)) specs.
        out = _build_call(tile_b, n_tiles, in_p, hid_p, out_p, compute_dtype,
                          single_buffer_weights=False)(*args)

    return out[:B, :out_dim]


def init_params(key, input_dim, hidden_dim, output_dim):
    """Deterministic init mimicking nn.Linear's U(-1/sqrt(fan_in), 1/sqrt(fan_in))."""
    ks = jax.random.split(key, 6)

    def linear(kw, kb, fan_in, fan_out):
        bound = 1.0 / jnp.sqrt(fan_in)
        w = jax.random.uniform(kw, (fan_in, fan_out), jnp.float32, -bound, bound)
        b = jax.random.uniform(kb, (1, fan_out), jnp.float32, -bound, bound)
        return w, b

    w1, b1 = linear(ks[0], ks[1], input_dim, hidden_dim)
    w2, b2 = linear(ks[2], ks[3], hidden_dim, hidden_dim)
    w3, b3 = linear(ks[4], ks[5], hidden_dim, output_dim)
    return {"w1": w1, "b1": b1, "w2": w2, "b2": b2, "w3": w3, "b3": b3}


def mlp_ref(x, p):
    """Pure-f32 JAX reference of the PyTorch forward."""
    h = jax.nn.relu(x @ p["w1"] + p["b1"])
    h = jax.nn.relu(h @ p["w2"] + p["b2"])
    return jax.nn.sigmoid(h @ p["w3"] + p["b3"])


if __name__ == "__main__":
    B, INPUT_DIM, HIDDEN_DIM, OUTPUT_DIM = 256, 32, 64, 16

    key = jax.random.PRNGKey(0)
    kx, kp = jax.random.split(key)
    x = jax.random.normal(kx, (B, INPUT_DIM), dtype=jnp.float32)
    params = init_params(kp, INPUT_DIM, HIDDEN_DIM, OUTPUT_DIM)

    # tile_b=128 -> grid of 2 independent ("parallel") batch tiles: pipelined
    # x/out DMA and both TensorCores busy on v7x.
    out = mlp_forward(x, params, tile_b=128)
    out = jax.block_until_ready(out)

    ref = mlp_ref(x, params)
    assert out.shape == (B, OUTPUT_DIM)
    # bf16 matmul inputs (f32 accumulate) -> allow bf16-level tolerance vs f32 ref.
    max_err = float(jnp.max(jnp.abs(out - ref)))
    assert max_err < 2e-2, f"max abs err {max_err}"

    print("KERNEL_OK")
</pallas_src>

<mosaic_0001>
module attributes {stable_mosaic.version = 11 : i64} {
  func.func @mlp_kernel(%arg0: i32, %arg1: memref<128x128xbf16, #tpu.memory_space<vmem>>, %arg2: memref<128x128xbf16, #tpu.memory_space<vmem>>, %arg3: memref<1x128xf32, #tpu.memory_space<vmem>>, %arg4: memref<128x128xbf16, #tpu.memory_space<vmem>>, %arg5: memref<1x128xf32, #tpu.memory_space<vmem>>, %arg6: memref<128x128xbf16, #tpu.memory_space<vmem>>, %arg7: memref<1x128xf32, #tpu.memory_space<vmem>>, %arg8: memref<128x128xf32, #tpu.memory_space<vmem>>) attributes {dimension_semantics = [#tpu.dimension_semantics<parallel>], iteration_bounds = array<i64: 2>, scalar_prefetch = 0 : i64, scratch_operands = 0 : i64, tpu.core_type = #tpu.core_type<tc>, window_params = [{transform_indices = @transform_0, window_bounds = array<i64: 128, 128>}, {pipeline_mode = #tpu.pipeline_mode<synchronous>, transform_indices = @transform_1, window_bounds = array<i64: 128, 128>}, {pipeline_mode = #tpu.pipeline_mode<synchronous>, transform_indices = @transform_2, window_bounds = array<i64: 1, 128>}, {pipeline_mode = #tpu.pipeline_mode<synchronous>, transform_indices = @transform_3, window_bounds = array<i64: 128, 128>}, {pipeline_mode = #tpu.pipeline_mode<synchronous>, transform_indices = @transform_4, window_bounds = array<i64: 1, 128>}, {pipeline_mode = #tpu.pipeline_mode<synchronous>, transform_indices = @transform_5, window_bounds = array<i64: 128, 128>}, {pipeline_mode = #tpu.pipeline_mode<synchronous>, transform_indices = @transform_6, window_bounds = array<i64: 1, 128>}, {transform_indices = @transform_7, window_bounds = array<i64: 128, 128>}]} {
    %c0 = arith.constant 0 : index
    %c0_0 = arith.constant 0 : index
    %0 = vector.load %arg1[%c0, %c0_0] : memref<128x128xbf16, #tpu.memory_space<vmem>>, vector<128x128xbf16>
    %c0_1 = arith.constant 0 : index
    %c0_2 = arith.constant 0 : index
    %1 = vector.load %arg2[%c0_1, %c0_2] : memref<128x128xbf16, #tpu.memory_space<vmem>>, vector<128x128xbf16>
    %cst = arith.constant dense<0.000000e+00> : vector<128x128xf32>
    %2 = tpu.matmul %0, %1, %cst {dimension_numbers = #tpu.dot_dimension_numbers<[1], [0], [0], [1], [0, 0, 1, 1], [], []>} : vector<128x128xbf16>, vector<128x128xbf16>, vector<128x128xf32> -> vector<128x128xf32>
    %c0_3 = arith.constant 0 : index
    %c0_4 = arith.constant 0 : index
    %3 = vector.load %arg3[%c0_3, %c0_4] : memref<1x128xf32, #tpu.memory_space<vmem>>, vector<1x128xf32>
    %4 = vector.broadcast %3 : vector<1x128xf32> to vector<128x128xf32>
    %5 = arith.addf %2, %4 : vector<128x128xf32>
    %cst_5 = arith.constant 0.000000e+00 : f32
    %6 = vector.broadcast %cst_5 : f32 to vector<128x128xf32>
    %7 = arith.maximumf %5, %6 : vector<128x128xf32>
    %8 = arith.truncf %7 : vector<128x128xf32> to vector<128x128xbf16>
    %c0_6 = arith.constant 0 : index
    %c0_7 = arith.constant 0 : index
    %9 = vector.load %arg4[%c0_6, %c0_7] : memref<128x128xbf16, #tpu.memory_space<vmem>>, vector<128x128xbf16>
    %cst_8 = arith.constant dense<0.000000e+00> : vector<128x128xf32>
    %10 = tpu.matmul %8, %9, %cst_8 {dimension_numbers = #tpu.dot_dimension_numbers<[1], [0], [0], [1], [0, 0, 1, 1], [], []>} : vector<128x128xbf16>, vector<128x128xbf16>, vector<128x128xf32> -> vector<128x128xf32>
    %c0_9 = arith.constant 0 : index
    %c0_10 = arith.constant 0 : index
    %11 = vector.load %arg5[%c0_9, %c0_10] : memref<1x128xf32, #tpu.memory_space<vmem>>, vector<1x128xf32>
    %12 = vector.broadcast %11 : vector<1x128xf32> to vector<128x128xf32>
    %13 = arith.addf %10, %12 : vector<128x128xf32>
    %cst_11 = arith.constant 0.000000e+00 : f32
    %14 = vector.broadcast %cst_11 : f32 to vector<128x128xf32>
    %15 = arith.maximumf %13, %14 : vector<128x128xf32>
    %16 = arith.truncf %15 : vector<128x128xf32> to vector<128x128xbf16>
    %c0_12 = arith.constant 0 : index
    %c0_13 = arith.constant 0 : index
    %17 = vector.load %arg6[%c0_12, %c0_13] : memref<128x128xbf16, #tpu.memory_space<vmem>>, vector<128x128xbf16>
    %cst_14 = arith.constant dense<0.000000e+00> : vector<128x128xf32>
    %18 = tpu.matmul %16, %17, %cst_14 {dimension_numbers = #tpu.dot_dimension_numbers<[1], [0], [0], [1], [0, 0, 1, 1], [], []>} : vector<128x128xbf16>, vector<128x128xbf16>, vector<128x128xf32> -> vector<128x128xf32>
    %c0_15 = arith.constant 0 : index
    %c0_16 = arith.constant 0 : index
    %19 = vector.load %arg7[%c0_15, %c0_16] : memref<1x128xf32, #tpu.memory_space<vmem>>, vector<1x128xf32>
    %20 = vector.broadcast %19 : vector<1x128xf32> to vector<128x128xf32>
    %21 = arith.addf %18, %20 : vector<128x128xf32>
    %22 = arith.negf %21 : vector<128x128xf32>
    %23 = math.exp %22 : vector<128x128xf32>
    %cst_17 = arith.constant 1.000000e+00 : f32
    %24 = vector.broadcast %cst_17 : f32 to vector<128x128xf32>
    %25 = arith.addf %24, %23 : vector<128x128xf32>
    %26 = arith.divf %24, %25 : vector<128x128xf32>
    %c0_18 = arith.constant 0 : index
    %c0_19 = arith.constant 0 : index
    %27 = vector.load %arg8[%c0_18, %c0_19] : memref<128x128xf32, #tpu.memory_space<vmem>>, vector<128x128xf32>
    tpu.vector_store %arg8[%c0_18, %c0_19], %26 {strides = array<i32>} : memref<128x128xf32, #tpu.memory_space<vmem>>, vector<128x128xf32>,
    return
  }
  func.func @transform_0(%arg0: i32) -> (i32, i32) {
    %c0_i32 = arith.constant 0 : i32
    %c0_i32_0 = arith.constant 0 : i32
    return %arg0, %c0_i32 : i32, i32
  }
  func.func @transform_1(%arg0: i32) -> (i32, i32) {
    %c0_i32 = arith.constant 0 : i32
    %c0_i32_0 = arith.constant 0 : i32
    %c0_i32_1 = arith.constant 0 : i32
    return %c0_i32, %c0_i32_0 : i32, i32
  }
  func.func @transform_2(%arg0: i32) -> (i32, i32) {
    %c0_i32 = arith.constant 0 : i32
    %c0_i32_0 = arith.constant 0 : i32
    %c0_i32_1 = arith.constant 0 : i32
    return %c0_i32, %c0_i32_0 : i32, i32
  }
  func.func @transform_3(%arg0: i32) -> (i32, i32) {
    %c0_i32 = arith.constant 0 : i32
    %c0_i32_0 = arith.constant 0 : i32
    %c0_i32_1 = arith.constant 0 : i32
    return %c0_i32, %c0_i32_0 : i32, i32
  }
  func.func @transform_4(%arg0: i32) -> (i32, i32) {
    %c0_i32 = arith.constant 0 : i32
    %c0_i32_0 = arith.constant 0 : i32
    %c0_i32_1 = arith.constant 0 : i32
    return %c0_i32, %c0_i32_0 : i32, i32
  }
  func.func @transform_5(%arg0: i32) -> (i32, i32) {
    %c0_i32 = arith.constant 0 : i32
    %c0_i32_0 = arith.constant 0 : i32
    %c0_i32_1 = arith.constant 0 : i32
    return %c0_i32, %c0_i32_0 : i32, i32
  }
  func.func @transform_6(%arg0: i32) -> (i32, i32) {
    %c0_i32 = arith.constant 0 : i32
    %c0_i32_0 = arith.constant 0 : i32
    %c0_i32_1 = arith.constant 0 : i32
    return %c0_i32, %c0_i32_0 : i32, i32
  }
  func.func @transform_7(%arg0: i32) -> (i32, i32) {
    %c0_i32 = arith.constant 0 : i32
    %c0_i32_0 = arith.constant 0 : i32
    return %arg0, %c0_i32 : i32, i32
  }
}

module attributes {stable_mosaic.version = 11 : i64} {
  func.func @mlp_kernel(%arg0: i32, %arg1: memref<128x128xbf16, #tpu.memory_space<vmem>>, %arg2: memref<128x128xbf16, #tpu.memory_space<vmem>>, %arg3: memref<1x128xf32, #tpu.memory_space<vmem>>, %arg4: memref<128x128xbf16, #tpu.memory_space<vmem>>, %arg5: memref<1x128xf32, #tpu.memory_space<vmem>>, %arg6: memref<128x128xbf16, #tpu.memory_space<vmem>>, %arg7: memref<1x128xf32, #tpu.memory_space<vmem>>, %arg8: memref<128x128xf32, #tpu.memory_space<vmem>>) attributes {dimension_semantics = [#tpu.dimension_semantics<parallel>], iteration_bounds = array<i64: 2>, scalar_prefetch = 0 : i64, scratch_operands = 0 : i64, tpu.core_type = #tpu.core_type<tc>, window_params = [{transform_indices = @transform_0, window_bounds = array<i64: 128, 128>}, {pipeline_mode = #tpu.pipeline_mode<synchronous>, transform_indices = @transform_1, window_bounds = array<i64: 128, 128>}, {pipeline_mode = #tpu.pipeline_mode<synchronous>, transform_indices = @transform_2, window_bounds = array<i64: 1, 128>}, {pipeline_mode = #tpu.pipeline_mode<synchronous>, transform_indices = @transform_3, window_bounds = array<i64: 128, 128>}, {pipeline_mode = #tpu.pipeline_mode<synchronous>, transform_indices = @transform_4, window_bounds = array<i64: 1, 128>}, {pipeline_mode = #tpu.pipeline_mode<synchronous>, transform_indices = @transform_5, window_bounds = array<i64: 128, 128>}, {pipeline_mode = #tpu.pipeline_mode<synchronous>, transform_indices = @transform_6, window_bounds = array<i64: 1, 128>}, {transform_indices = @transform_7, window_bounds = array<i64: 128, 128>}]} {
    %c0 = arith.constant 0 : index
    %c0_0 = arith.constant 0 : index
    %0 = vector.load %arg1[%c0, %c0_0] : memref<128x128xbf16, #tpu.memory_space<vmem>>, vector<128x128xbf16>
    %c0_1 = arith.constant 0 : index
    %c0_2 = arith.constant 0 : index
    %1 = vector.load %arg2[%c0_1, %c0_2] : memref<128x128xbf16, #tpu.memory_space<vmem>>, vector<128x128xbf16>
    %cst = arith.constant dense<0.000000e+00> : vector<128x128xf32>
    %2 = tpu.matmul %0, %1, %cst {dimension_numbers = #tpu.dot_dimension_numbers<[1], [0], [0], [1], [0, 0, 1, 1], [], []>} : vector<128x128xbf16>, vector<128x128xbf16>, vector<128x128xf32> -> vector<128x128xf32>
    %c0_3 = arith.constant 0 : index
    %c0_4 = arith.constant 0 : index
    %3 = vector.load %arg3[%c0_3, %c0_4] : memref<1x128xf32, #tpu.memory_space<vmem>>, vector<1x128xf32>
    %4 = vector.broadcast %3 : vector<1x128xf32> to vector<128x128xf32>
    %5 = arith.addf %2, %4 : vector<128x128xf32>
    %cst_5 = arith.constant 0.000000e+00 : f32
    %6 = vector.broadcast %cst_5 : f32 to vector<128x128xf32>
    %7 = arith.maximumf %5, %6 : vector<128x128xf32>
    %8 = arith.truncf %7 : vector<128x128xf32> to vector<128x128xbf16>
    %c0_6 = arith.constant 0 : index
    %c0_7 = arith.constant 0 : index
    %9 = vector.load %arg4[%c0_6, %c0_7] : memref<128x128xbf16, #tpu.memory_space<vmem>>, vector<128x128xbf16>
    %cst_8 = arith.constant dense<0.000000e+00> : vector<128x128xf32>
    %10 = tpu.matmul %8, %9, %cst_8 {dimension_numbers = #tpu.dot_dimension_numbers<[1], [0], [0], [1], [0, 0, 1, 1], [], []>} : vector<128x128xbf16>, vector<128x128xbf16>, vector<128x128xf32> -> vector<128x128xf32>
    %c0_9 = arith.constant 0 : index
    %c0_10 = arith.constant 0 : index
    %11 = vector.load %arg5[%c0_9, %c0_10] : memref<1x128xf32, #tpu.memory_space<vmem>>, vector<1x128xf32>
    %12 = vector.broadcast %11 : vector<1x128xf32> to vector<128x128xf32>
    %13 = arith.addf %10, %12 : vector<128x128xf32>
    %cst_11 = arith.constant 0.000000e+00 : f32
    %14 = vector.broadcast %cst_11 : f32 to vector<128x128xf32>
    %15 = arith.maximumf %13, %14 : vector<128x128xf32>
    %16 = arith.truncf %15 : vector<128x128xf32> to vector<128x128xbf16>
    %c0_12 = arith.constant 0 : index
    %c0_13 = arith.constant 0 : index
    %17 = vector.load %arg6[%c0_12, %c0_13] : memref<128x128xbf16, #tpu.memory_space<vmem>>, vector<128x128xbf16>
    %cst_14 = arith.constant dense<0.000000e+00> : vector<128x128xf32>
    %18 = tpu.matmul %16, %17, %cst_14 {dimension_numbers = #tpu.dot_dimension_numbers<[1], [0], [0], [1], [0, 0, 1, 1], [], []>} : vector<128x128xbf16>, vector<128x128xbf16>, vector<128x128xf32> -> vector<128x128xf32>
    %c0_15 = arith.constant 0 : index
    %c0_16 = arith.constant 0 : index
    %19 = vector.load %arg7[%c0_15, %c0_16] : memref<1x128xf32, #tpu.memory_space<vmem>>, vector<1x128xf32>
    %20 = vector.broadcast %19 : vector<1x128xf32> to vector<128x128xf32>
    %21 = arith.addf %18, %20 : vector<128x128xf32>
    %22 = arith.negf %21 : vector<128x128xf32>
    %23 = math.exp %22 : vector<128x128xf32>
    %cst_17 = arith.constant 1.000000e+00 : f32
    %24 = vector.broadcast %cst_17 : f32 to vector<128x128xf32>
    %25 = arith.addf %24, %23 : vector<128x128xf32>
    %26 = arith.divf %24, %25 : vector<128x128xf32>
    %c0_18 = arith.constant 0 : index
    %c0_19 = arith.constant 0 : index
    %27 = vector.load %arg8[%c0_18, %c0_19] : memref<128x128xf32, #tpu.memory_space<vmem>>, vector<128x128xf32>
    tpu.vector_store %arg8[%c0_18, %c0_19], %26 {strides = array<i32>} : memref<128x128xf32, #tpu.memory_space<vmem>>, vector<128x128xf32>,
    return
  }
  func.func @transform_0(%arg0: i32) -> (i32, i32) {
    %c0_i32 = arith.constant 0 : i32
    %c0_i32_0 = arith.constant 0 : i32
    return %arg0, %c0_i32 : i32, i32
  }
  func.func @transform_1(%arg0: i32) -> (i32, i32) {
    %c0_i32 = arith.constant 0 : i32
    %c0_i32_0 = arith.constant 0 : i32
    %c0_i32_1 = arith.constant 0 : i32
    return %c0_i32, %c0_i32_0 : i32, i32
  }
  func.func @transform_2(%arg0: i32) -> (i32, i32) {
    %c0_i32 = arith.constant 0 : i32
    %c0_i32_0 = arith.constant 0 : i32
    %c0_i32_1 = arith.constant 0 : i32
    return %c0_i32, %c0_i32_0 : i32, i32
  }
  func.func @transform_3(%arg0: i32) -> (i32, i32) {
    %c0_i32 = arith.constant 0 : i32
    %c0_i32_0 = arith.constant 0 : i32
    %c0_i32_1 = arith.constant 0 : i32
    return %c0_i32, %c0_i32_0 : i32, i32
  }
  func.func @transform_4(%arg0: i32) -> (i32, i32) {
    %c0_i32 = arith.constant 0 : i32
    %c0_i32_0 = arith.constant 0 : i32
    %c0_i32_1 = arith.constant 0 : i32
    return %c0_i32, %c0_i32_0 : i32, i32
  }
  func.func @transform_5(%arg0: i32) -> (i32, i32) {
    %c0_i32 = arith.constant 0 : i32
    %c0_i32_0 = arith.constant 0 : i32
    %c0_i32_1 = arith.constant 0 : i32
    return %c0_i32, %c0_i32_0 : i32, i32
  }
  func.func @transform_6(%arg0: i32) -> (i32, i32) {
    %c0_i32 = arith.constant 0 : i32
    %c0_i32_0 = arith.constant 0 : i32
    %c0_i32_1 = arith.constant 0 : i32
    return %c0_i32, %c0_i32_0 : i32, i32
  }
  func.func @transform_7(%arg0: i32) -> (i32, i32) {
    %c0_i32 = arith.constant 0 : i32
    %c0_i32_0 = arith.constant 0 : i32
    return %arg0, %c0_i32 : i32, i32
  }
}

</mosaic_0001>

<bundles_post_ra>
// kernel: tpu_custom_call.1
= control target key start
LH: loop header
LB: loop body
LE: loop exit
PB: predicated region body
PF: predicated region fallthrough
CT: control target
= control target key end

     0   :  { %12 = vsyncpa [#allocation3], 0  ;;  %s2201_s0 = inlined_call_operand.hbm [shape: bf16[256,128], index: 0, kind: input, shape index: {}]   ;;  %s2202_s1 = inlined_call_operand.hbm [shape: bf16[128,128], index: 1, kind: input, shape index: {}]   ;;  %s2203_s2 = inlined_call_operand.vmem [shape: f32[1,128], index: 2, kind: input, shape index: {}]   ;;  %s2204_s3 = inlined_call_operand.hbm [shape: bf16[128,128], index: 3, kind: input, shape index: {}]   ;;  %s2205_s4 = inlined_call_operand.vmem [shape: f32[1,128], index: 4, kind: input, shape index: {}]   ;;  %s2206_s5 = inlined_call_operand.hbm [shape: bf16[128,128], index: 5, kind: input, shape index: {}]   ;;  %s2207_s6 = inlined_call_operand.vmem [shape: f32[1,128], index: 6, kind: input, shape index: {}]   ;;  %s2208_s7 = inlined_call_operand.hbm [shape: f32[256,128], index: 7, kind: output, shape index: {}]  }
   0x1   :  { %14 = vsyncpa [#allocation3 + $0x1], 0 }
   0x2   :  { %15 = vsyncpa [#allocation6], 0 }
   0x3   :  { %16 = vsyncpa [#allocation9], 0 }
   0x4   :  { %17 = vsyncpa [#allocation4], 0 }
   0x5   :  { %19 = vsyncpa [#allocation4 + $0x1], 0  ;;  %s1837_s24 = smov 0   ;;  %s1839_s25 = smov 0  }
   0x6   :  { %s1841_s26 = smov 0   ;;  %s1843_s27 = smov 0  }
   0x7 LB: > { %s1858_s28 = sadd.s32 4294967295, %s1786_s27   ;;  %s1188_s29 = sadd.s32 4294967294, %s1786_s27   ;;  %s1786_s27 = sphi %s1843_s27, %s2234_s27   ;;  %s1782_s26 = sphi %s1841_s26, %s2233_s26   ;;  %s1778_s25 = sphi %s1839_s25, %s2232_s25   ;;  %s1774_s24 = sphi %s1837_s24, %s2231_s24  }
   0x8   : > { %p45_p0 = scmp.ne.s32.totalorder %s1778_s25, %s1774_s24  ;;  %p2209_p1 = scmp.eq.s32.totalorder %s1858_s28, 0 }
   0x9   : > { %p201_p3 = scmp.eq.s32.totalorder %s1188_s29, 1  ;;  %p1189_p5 = scmp.ge.s32.totalorder %s1786_s27, 1 }
   0xa   : > { %p1867_p4 = por %p2209_p1, %p45_p0  ;;  %p208_p7 = scmp.lt.s32.totalorder %s1786_s27, 3 }
   0xb   : > { %p1872_p6 = por %p201_p3, %p45_p0  ;;  %s1788_s10 = smov [#allocation5]  }
   0xc   : > { %s2213_s30 = scalar_select %p1867_p4, 1, 0 }
   0xd   : > { %s2214_s8 = scalar_select %p1872_p6, 1, 0 }
   0xe   : > { %p1877_p8 = pnand %p1189_p5, %p208_p7  ;;  %s220_s11 = sshll.u32 %s1788_s10, 4  ;;  %s1881_s11 = int_to_ptr.vmem [resolvable:$true] %s220_s11 }
   0xf   : > { %2215 = sst [smem:[#allocation15_spill]] %s2214_s8  ;;  %s1789_s13 = smov [#allocation7]  }
  0x10   : > { %s2216_s9 = scalar_select %p1877_p8, 1, 0 }
  0x11   : > { %p1437_p9 = pneg %p1877_p8  ;;  %s236_s14 = sshll.u32 %s1789_s13, 4  ;;  %s1892_s14 = int_to_ptr.vmem [resolvable:$true] %s236_s14 }
  0x12   : > { %s1790_s15 = smov [#allocation8]   ;;  %s1598_s19 = scalar_lea.hbm %s2202_s1, 1024 }
  0x13   : > { %p1888_p11 = pnand %p1437_p9, %p2209_p1  ;;  %s1894_s16 = sshll.u32 %s1790_s15, 4  ;;  %s253_s16 = int_to_ptr.vmem [resolvable:$true] %s1894_s16 }
  0x14   : > { %p1599_p12 = scmp.ne.s32.totalorder %s2202_s1, %s1598_s19  ;;  %p1605_p5 = scmp.lt.u32.totalorder %s1598_s19, %s2202_s1 }
  0x15   : > { %p1904_p13 = pneg %p1888_p11 }
  0x17   : > { %p1601_p0 = pnand %p1904_p13, %p1599_p12 }
  0x19   : > { %p1602_p3 = pneg %p1601_p0 }
  0x1b   : > { %p1607_p7 = pnand %p1605_p5, %p1602_p3 }
  0x1d   : > { %1610 = shalt.err (!%p1607_p7)
}
  0x1e   : > { %s1611_s10 = scalar_lea.vmem %s1881_s11, 1024  ;;  %p1619_p2 = scmp.lt.s32.totalorder %s1881_s11, %s1881_s11 }
  0x1f   : > { %p1612_p9 = scmp.ne.s32.totalorder %s1881_s11, %s1611_s10  ;;  %p1620_p6 = scmp.lt.s32.totalorder %s1611_s10, %s1611_s10 }
  0x21   : > { %p1614_p10 = pnand %p1612_p9, %p1904_p13  ;;  %p1621_p12 = por %p1620_p6, %p1619_p2 }
  0x23   : > { %p1615_p1 = pneg %p1614_p10 }
  0x25   : > { %p1622_p0 = pnand %p1621_p12, %p1615_p1 }
  0x27   : > { %1625 = shalt.err (!%p1622_p0)
}
  0x28   : > { %s1791_s13 = smov 64   ;;  %s1792_s15 = smov 4  }
  0x29   : > { %1440 = dma.hbm_to_vmem [thread:$0]  (!%p1888_p11), %s2202_s1, 1024, %s1881_s11, [#allocation6], %s1791_s13, %s1791_s13, %s1792_s15  }
  0x2a   : > { %s1626_s21 = scalar_lea.hbm %s2204_s3, 1024 }
  0x2b   : > { %p1627_p1 = scmp.ne.s32.totalorder %s2204_s3, %s1626_s21  ;;  %p1633_p10 = scmp.lt.u32.totalorder %s1626_s21, %s2204_s3 }
  0x2d   : > { %p1629_p2 = pnand %p1627_p1, %p1904_p13 }
  0x2f   : > { %p1630_p6 = pneg %p1629_p2 }
  0x31   : > { %p1635_p3 = pnand %p1633_p10, %p1630_p6 }
  0x33   : > { %1638 = shalt.err (!%p1635_p3)
}
  0x34   : > { %s1639_s11 = scalar_lea.vmem %s1892_s14, 1024  ;;  %p1647_p12 = scmp.lt.s32.totalorder %s1892_s14, %s1892_s14 }
  0x35   : > { %p1640_p5 = scmp.ne.s32.totalorder %s1892_s14, %s1639_s11  ;;  %p1648_p0 = scmp.lt.s32.totalorder %s1639_s11, %s1639_s11 }
  0x37   : > { %p1642_p7 = pnand %p1640_p5, %p1904_p13  ;;  %p1649_p1 = por %p1648_p0, %p1647_p12 }
  0x39   : > { %p1643_p9 = pneg %p1642_p7 }
  0x3b   : > { %p1650_p2 = pnand %p1649_p1, %p1643_p9 }
  0x3d   : > { %1653 = shalt.err (!%p1650_p2)
}
  0x3e   : > { %1443 = dma.hbm_to_vmem [thread:$0]  (!%p1888_p11), %s2204_s3, 1024, %s1892_s14, [#allocation6], %s1791_s13, %s1791_s13, %s1792_s15  }
  0x3f   : > { %s1654_s20 = scalar_lea.hbm %s2206_s5, 1024 }
  0x40   : > { %p1655_p6 = scmp.ne.s32.totalorder %s2206_s5, %s1654_s20  ;;  %p1661_p5 = scmp.lt.u32.totalorder %s1654_s20, %s2206_s5 }
  0x42   : > { %p1657_p10 = pnand %p1655_p6, %p1904_p13 }
  0x44   : > { %p1658_p3 = pneg %p1657_p10 }
  0x46   : > { %p1663_p7 = pnand %p1661_p5, %p1658_p3 }
  0x48   : > { %1666 = shalt.err (!%p1663_p7)
}
  0x49   : > { %s1667_s11 = scalar_lea.vmem %s253_s16, 1024  ;;  %p1675_p1 = scmp.lt.s32.totalorder %s253_s16, %s253_s16 }
  0x4a   : > { %p1668_p9 = scmp.ne.s32.totalorder %s253_s16, %s1667_s11  ;;  %p1676_p2 = scmp.lt.s32.totalorder %s1667_s11, %s1667_s11 }
  0x4c   : > { %p1670_p12 = pnand %p1668_p9, %p1904_p13  ;;  %p1677_p4 = por %p1676_p2, %p1675_p1 }
  0x4e   : > { %p1671_p0 = pneg %p1670_p12 }
  0x50   : > { %p1678_p8 = pnand %p1677_p4, %p1671_p0 }
  0x52   : > { %1681 = shalt.err (!%p1678_p8)
}
  0x53   : > { %1446 = dma.hbm_to_vmem [thread:$0]  (!%p1888_p11), %s2206_s5, 1024, %s253_s16, [#allocation9], %s1791_s13, %s1791_s13, %s1792_s15  }
  0x54   : > { %s1977_s22 = sadd.s32 1, %s1786_s27   ;;  %s32_s17 = sadd.s32 1, %s1782_s26 }
  0x55   : > { %s29_s12 = ssub.s32 %s1786_s27, %s1977_s22  ;;  %p39_p8 = scmp.ne.s32.totalorder %s1782_s26, %s1778_s25 }
  0x56   : > { %p30_p4 = scmp.eq.s32.totalorder %s29_s12, 0  ;;  %p40_p13 = scmp.eq.s32.totalorder %s1786_s27, 0 }
  0x57   : > { %p1458_p6 = scmp.lt.s32.totalorder %s1786_s27, 2  ;;  %p2219_p3 = scmp.eq.s32.totalorder %s1858_s28, 1 }
  0x58   : > { %s1987_s18 = scalar_select %p30_p4, %s1782_s26, %s32_s17  }
  0x59   : > { %p41_p10 = por %p40_p13, %p39_p8  ;;  %p1991_p5 = por %p2219_p3, %p39_p8 }
  0x5a   : > { %s269_s20 = sand.u32 1, %s1782_s26   ;;  %s1259_s21 = sshll.u32 %s1786_s27, 10 }
  0x5b   : > { %s1194_s16 = sshll.u32 %s269_s20, 6  ;;  %s2000_s10 = scalar_lea.hbm %s2201_s0, %s1259_s21 }
  0x5c   : > { %s273_s11 = scalar_lea.vmem [#allocation2], %s1194_s16  ;;  %p2002_p11 = pnand %p1458_p6, %p41_p10 }
  0x5d   : > { %s280_s14 = sshll.u32 %s273_s11, 4  ;;  %s2008_s12 = scalar_lea.sflag [#allocation3], %s269_s20  ;;  %s2006_s14 = int_to_ptr.vmem [resolvable:$true] %s280_s14 }
  0x5e   : > { %s1682_s17 = scalar_lea.hbm %s2000_s10, 1024  ;;  %p1684_p9 = pneg %p2002_p11 }
  0x5f   : > { %p1683_p7 = scmp.ne.s32.totalorder %s2000_s10, %s1682_s17  ;;  %s1687_s23 = scalar_lea.hbm %s2201_s0, 2048 }
  0x60   : > { %p1688_p1 = scmp.lt.u32.totalorder %s2000_s10, %s2201_s0  ;;  %p1689_p2 = scmp.lt.u32.totalorder %s1687_s23, %s1682_s17 }
  0x61   : > { %p1685_p12 = pnand %p1684_p9, %p1683_p7  ;;  %p1691_p8 = scmp.lt.u32.totalorder %s1682_s17, %s2000_s10 }
  0x62   : > { %p1690_p4 = por %p1689_p2, %p1688_p1 }
  0x63   : > { %p1686_p0 = pneg %p1685_p12 }
  0x64   : > { %p1692_p13 = por %p1691_p8, %p1690_p4 }
  0x66   : > { %p1693_p6 = pnand %p1692_p13, %p1686_p0 }
  0x68   : > { %1696 = shalt.err (!%p1693_p6)
}
  0x69   : > { %s1697_s20 = scalar_lea.vmem %s2006_s14, 1024  ;;  %s1793_s21 = smov [#allocation2]  }
  0x6a   : > { %p1698_p10 = scmp.ne.s32.totalorder %s2006_s14, %s1697_s20  ;;  %s1702_s16 = sshll.u32 %s1793_s21, 4  ;;  %s1703_s16 = int_to_ptr.vmem [resolvable:$false] %s1702_s16 }
  0x6b   : > { %s1704_s29 = scalar_lea.vmem %s1703_s16, 2048  ;;  %p1705_p12 = scmp.lt.s32.totalorder %s2006_s14, %s1703_s16 }
  0x6c   : > { %p1700_p3 = pnand %p1698_p10, %p1684_p9  ;;  %p1706_p1 = scmp.lt.s32.totalorder %s1704_s29, %s1697_s20 }
  0x6e   : > { %p1701_p7 = pneg %p1700_p3  ;;  %p1707_p2 = por %p1706_p1, %p1705_p12 }
  0x70   : > { %p1708_p4 = pnand %p1707_p2, %p1701_p7 }
  0x72   : > { %1711 = shalt.err (!%p1708_p4)
}
  0x73   : > { %1450 = dma.hbm_to_vmem [thread:$0]  (!%p2002_p11), %s2000_s10, 1024, %s2006_s14, %s2008_s12, %s1791_s13, %s1791_s13, %s1792_s15  }
  0x74   : > { %p2222_p9 = scmp.ne.s32.totalorder %s2216_s9, 0 }
  0x75   : > { %s2042_s17 = sand.u32 (!%p2222_p9), 1, %s1778_s25   ;;  %p2223_p0 = scmp.ne.s32.totalorder (!%p2222_p9), %s2213_s30, 0 }
  0x76   : > { %292 = sbr.rel (%p2222_p9) target bundleno = 893 (0x37d), region = 48  ;;  %s1198_s23 = sshll.u32 (!%p2222_p9), %s2042_s17, 6 }
  0x77   : > { %s295_s11 = scalar_lea.sflag (!%p2222_p9), [#allocation3], %s2042_s17  ;;  %s2046_s20 = scalar_lea.vmem (!%p2222_p9), [#allocation2], %s1198_s23 }
  0x7d   : > { %1757 = dma.done.wait (%p2223_p0), %s295_s11, 1024  }
  0x7e   : > { %1759 = vsyncadd (%p2223_p0), %s295_s11, 4294966272  ;;  %p2224_p11 = scmp.eq.s32.totalorder %s1858_s28, 0 }
  0x80   : > { %1761 = dma.done.wait (%p2224_p11), [#allocation6], 2048   ;;  %p2225_p8 = pmov %p2224_p11 }
  0x82   : > { %1763 = vsyncadd (%p2225_p8), [#allocation6], 4294965248  ;;  %p2226_p13 = pmov %p2225_p8 }
  0x83   : > { %p2227_p6 = pmov %p2225_p8 }
  0x84   : > { %1765 = dma.done.wait (%p2226_p13), [#allocation9], 1024  }
  0x85   : > { %1767 = vsyncadd (%p2227_p6), [#allocation9], 4294966272  ;;  %v1502_v0 = vld [vmem:[#allocation5] sm:$0xff]   ;;  %v1503_v1 = vld [vmem:[#allocation5 + $0x8] sm:$0xff]   ;;  %s1202_s8 = sshll.u32 %s2042_s17, 7  ;;  %s1260_s21 = sshll.u32 %s1858_s28, 11 }
  0x86   : > { %1309 = vmatprep.subr.bf16.mxu0 %v1502_v0  ;;  %v1504_v2 = vld [vmem:[#allocation5 + $0x10] sm:$0xff]   ;;  %v1505_v3 = vld [vmem:[#allocation5 + $0x18] sm:$0xff]   ;;  %v1510_v4 = vld [vmem:[%s2046_s20] sm:$0xff]   ;;  %s2132_s12 = scalar_lea.vmem [#allocation10], %s1202_s8  ;;  %s2152_s11 = scalar_lea.hbm %s2208_s7, %s1260_s21 }
  0x87   : > { %1310 = vmatpush3.bf16.msra.mxu0 %v1502_v0  ;;  %1325 = vmatprep.mubr.bf16.mxu0 %v1510_v4  ;;  %v1506_v5 = vld [vmem:[#allocation5 + $0x20] sm:$0xff]   ;;  %v1507_v6 = vld [vmem:[#allocation5 + $0x28] sm:$0xff]   ;;  %v1508_v9 = vld [vmem:[#allocation5 + $0x30] sm:$0xff]   ;;  %s1086_s16 = sshll.u32 %s2132_s12, 4  ;;  %s1073_s28 = scalar_lea.sflag [#allocation4], %s2042_s17  ;;  %s2154_s16 = int_to_ptr.vmem [resolvable:$true] %s1086_s16 }
  0x88   : > { %1311 = vmatprep.subr.bf16.mxu0 %v1503_v1  ;;  %v1518_v7 = vld [vmem:[#allocation7] sm:$0xff]   ;;  %v1519_v8 = vld [vmem:[#allocation7 + $0x8] sm:$0xff]   ;;  %v1520_v10 = vld [vmem:[#allocation7 + $0x10] sm:$0xff]   ;;  %s1794_s30 = smov [#allocation10]  }
  0x89   : > { %1341 = vmatprep.subr.bf16.mxu1 %v1518_v7  ;;  %v1509_v11 = vld [vmem:[#allocation5 + $0x38] sm:$0xff]   ;;  %v1522_v13 = vld [vmem:[#allocation7 + $0x20] sm:$0xff]   ;;  %v1511_v14 = vld [vmem:[%s2046_s20 + $0x8] sm:$0xff]   ;;  %s1716_s9 = sshll.u32 %s1794_s30, 4  ;;  %s1717_s9 = int_to_ptr.vmem [resolvable:$false] %s1716_s9 }
  0x8a   : > { %1342 = vmatpush3.bf16.msra.mxu1 %v1518_v7  ;;  %v1521_v12 = vld [vmem:[#allocation7 + $0x18] sm:$0xff]   ;;  %v1512_v15 = vld [vmem:[%s2046_s20 + $0x10] sm:$0xff]   ;;  %v1523_v16 = vld [vmem:[#allocation7 + $0x28] sm:$0xff]   ;;  %s1718_s13 = scalar_lea.vmem %s1717_s9, 4096  ;;  %p1719_p12 = scmp.lt.s32.totalorder %s2154_s16, %s1717_s9 }
  0x8b   : > { %1312 = vmatpush3.bf16.msra.mxu0 %v1503_v1  ;;  %1343 = vmatprep.subr.bf16.mxu1 %v1519_v8  ;;  %v1513_v17 = vld [vmem:[%s2046_s20 + $0x18] sm:$0xff]   ;;  %v1514_v18 = vld [vmem:[%s2046_s20 + $0x20] sm:$0xff]   ;;  %v1515_v19 = vld [vmem:[%s2046_s20 + $0x28] sm:$0xff]  }
  0x8c   : > { %1313 = vmatprep.subr.bf16.mxu0 %v1504_v2  ;;  %v1516_v20 = vld [vmem:[%s2046_s20 + $0x30] sm:$0xff]   ;;  %v1517_v21 = vld [vmem:[%s2046_s20 + $0x38] sm:$0xff]   ;;  %v1526_v24 = vld [vmem:[#allocation8] sm:$0xff]   ;;  %s1712_s20 = scalar_lea.vmem %s2154_s16, 2048 }
  0x8d   : > { %v1524_v22 = vld [vmem:[#allocation7 + $0x30] sm:$0xff]   ;;  %v1525_v23 = vld [vmem:[#allocation7 + $0x38] sm:$0xff]   ;;  %v1527_v25 = vld [vmem:[#allocation8 + $0x8] sm:$0xff]   ;;  %p1713_p10 = scmp.ne.s32.totalorder %s2154_s16, %s1712_s20  ;;  %p1720_p1 = scmp.lt.s32.totalorder %s1718_s13, %s1712_s20 }
  0x8e   : > { %1344 = vmatpush3.bf16.msra.mxu1 %v1519_v8  ;;  %v1528_v26 = vld [vmem:[#allocation8 + $0x10] sm:$0xff]   ;;  %v2068_v27 = vld [vmem:[#allocation8 + $0x18] sm:$0xff]   ;;  %v2071_v28 = vld [vmem:[#allocation8 + $0x20] sm:$0xff]  }
  0x8f   : > { %1314 = vmatpush3.bf16.msra.mxu0 %v1504_v2  ;;  %1345 = vmatprep.subr.bf16.mxu1 %v1520_v10  ;;  %v2075_v29 = vld [vmem:[#allocation8 + $0x28] sm:$0xff]   ;;  %v2083_v30 = vld [vmem:[%s2203_s2] ss:$0 sm:$0xff]  ;;  %p1714_p3 = pnand %p1713_p10, %p1991_p5  ;;  %p1721_p2 = por %p1720_p1, %p1719_p12 }
  0x90   : > { %1315 = vmatprep.subr.bf16.mxu0 %v1505_v3 }
  0x91   : > { %p1715_p7 = pneg %p1714_p3 }
  0x92   : > { %1346 = vmatpush3.bf16.msra.mxu1 %v1520_v10 }
  0x93   : > { %1316 = vmatpush3.bf16.msra.mxu0 %v1505_v3  ;;  %1347 = vmatprep.subr.bf16.mxu1 %v1521_v12  ;;  %p1722_p4 = pnand %p1721_p2, %p1715_p7 }
  0x94   : > { %1317 = vmatprep.subr.bf16.mxu0 %v1506_v5 }
  0x96   : > { %1348 = vmatpush3.bf16.msra.mxu1 %v1521_v12 }
  0x97   : > { %1318 = vmatpush3.bf16.msra.mxu0 %v1506_v5  ;;  %1349 = vmatprep.subr.bf16.mxu1 %v1522_v13 }
  0x98   : > { %1319 = vmatprep.subr.bf16.mxu0 %v1507_v6 }
  0x9a   : > { %1350 = vmatpush3.bf16.msra.mxu1 %v1522_v13 }
  0x9b   : > { %1320 = vmatpush3.bf16.msra.mxu0 %v1507_v6  ;;  %1351 = vmatprep.subr.bf16.mxu1 %v1523_v16 }
  0x9c   : > { %1321 = vmatprep.subr.bf16.mxu0 %v1508_v9 }
  0x9e   : > { %1352 = vmatpush3.bf16.msra.mxu1 %v1523_v16 }
  0x9f   : > { %1322 = vmatpush3.bf16.msra.mxu0 %v1508_v9  ;;  %1353 = vmatprep.subr.bf16.mxu1 %v1524_v22 }
  0xa0   : > { %1323 = vmatprep.subr.bf16.mxu0 %v1509_v11 }
  0xa2   : > { %1354 = vmatpush3.bf16.msra.mxu1 %v1524_v22 }
  0xa3   : > { %1324 = vmatpush3.bf16.msra.mxu0 %v1509_v11  ;;  %1355 = vmatprep.subr.bf16.mxu1 %v1525_v23 }
  0xa4   : > { %1373 = vmatprep.subr.bf16.mxu0 %v1526_v24 }
  0xa6   : > { %1326 = vmatmul.mubr.bf16.vlgmr.msra.gmra.mrb[0].mxu0 %v1511_v14  ;;  %1356 = vmatpush3.bf16.msra.mxu1 %v1525_v23  ;;  %v1532_v23 = vld [vmem:[#allocation8 + $0x30] sm:$0xff]  }
  0xa7   : > { %1329 = vmatprep.mubr.bf16.mxu0 %v1512_v15  ;;  %1405 = vmatprep.subr.bf16.mxu1 %v1526_v24 }
  0xa8   : > { %1374 = vmatpush3.bf16.msra.mxu0 %v1526_v24 }
  0xa9   : > { %1375 = vmatprep.subr.bf16.mxu0 %v1527_v25 }
  0xac   : > { %1376 = vmatpush3.bf16.msra.mxu0 %v1527_v25 }
  0xad   : > { %1377 = vmatprep.subr.bf16.mxu0 %v1528_v26 }
  0xae   : > { %1330 = vmatmul.mubr.bf16.gmra.mrb[4].mxu0 %v1513_v17 }
  0xaf   : > { %1333 = vmatprep.mubr.bf16.mxu0 %v1514_v18 }
  0xb0   : > { %1378 = vmatpush3.bf16.msra.mxu0 %v1528_v26 }
  0xb1   : > { %1379 = vmatprep.subr.bf16.mxu0 %v2068_v27 }
  0xb4   : > { %1380 = vmatpush3.bf16.msra.mxu0 %v2068_v27 }
  0xb5   : > { %1381 = vmatprep.subr.bf16.mxu0 %v2071_v28 }
  0xb6   : > { %1334 = vmatmul.mubr.bf16.gmra.mrb[8].mxu0 %v1515_v19 }
  0xb7   : > { %1337 = vmatprep.mubr.bf16.mxu0 %v1516_v20 }
  0xb8   : > { %1382 = vmatpush3.bf16.msra.mxu0 %v2071_v28 }
  0xb9   : > { %1383 = vmatprep.subr.bf16.mxu0 %v2075_v29 }
  0xbc   : > { %1384 = vmatpush3.bf16.msra.mxu0 %v2075_v29 }
  0xbd   : > { %1385 = vmatprep.subr.bf16.mxu0 %v1532_v23 }
  0xbe   : > { %1338 = vmatmul.mubr.bf16.gmra.mrb[12].mxu0 %v1517_v21 }
  0xc0   : > { %1386 = vmatpush3.bf16.msra.mxu0 %v1532_v23 }
 0x179   : > { %v1327_v31 = vpop.f32.mrb[0].mxu0 }
 0x17a   : > { %v522_v32 = vadd.f32 %v1327_v31, %v2083_v30  ;;  %v513_v33 = vpop.f32.mrb[1].mxu0 }
 0x17b   : > { %v514_v34 = vadd.f32 %v2083_v30, %v513_v33  ;;  %v1328_v35 = vpop.f32.mrb[2].mxu0 }
 0x17c   : > { %v525_v36 = vadd.f32 %v1328_v35, %v2083_v30  ;;  %v516_v37 = vpop.f32.mrb[3].mxu0  ;;  %v578_v39 = vmax.f32 %v522_v32, 0.0 }
 0x17d   : > { %v517_v38 = vadd.f32 %v2083_v30, %v516_v37  ;;  %v576_v41 = vmax.f32 %v514_v34, 0.0 }
 0x17e   : > { %v579_v40 = vmax.f32 %v525_v36, 0.0 }
 0x17f   : > { %v577_v42 = vmax.f32 %v517_v38, 0.0 }
 0x180   : > { %v593_v43 = vpack.c.bf16 %v579_v40, %v578_v39 }
 0x181   : > { %v1331_v44 = vpop.f32.mrb[4].mxu0  ;;  %v592_v45 = vpack.c.bf16 %v577_v42, %v576_v41 }
 0x182   : > { %v538_v46 = vadd.f32 %v1331_v44, %v2083_v30  ;;  %v529_v47 = vpop.f32.mrb[5].mxu0 }
 0x183   : > { %v530_v48 = vadd.f32 %v2083_v30, %v529_v47  ;;  %v1332_v49 = vpop.f32.mrb[6].mxu0  ;;  %1357 = vmatprep.mubr.bf16.mxu1 %v592_v45 }
 0x184   : > { %v541_v50 = vadd.f32 %v1332_v49, %v2083_v30  ;;  %v532_v51 = vpop.f32.mrb[7].mxu0  ;;  %1358 = vmatmul.mubr.bf16.vlgmr.msra.gmra.mrb[0].mxu1 %v593_v43  ;;  %v582_v53 = vmax.f32 %v538_v46, 0.0 }
 0x185   : > { %v533_v52 = vadd.f32 %v2083_v30, %v532_v51  ;;  %1413 = vmatpush3.bf16.msra.mxu1 %v1526_v24  ;;  %v580_v55 = vmax.f32 %v530_v48, 0.0  ;;  %v1533_v24 = vld [vmem:[#allocation8 + $0x38] sm:$0xff]  }
 0x186   : > { %v583_v54 = vmax.f32 %v541_v50, 0.0  ;;  %1406 = vmatprep.subr.bf16.mxu1 %v1527_v25  ;;  %1387 = vmatprep.subr.bf16.mxu0 %v1533_v24 }
 0x187   : > { %v581_v56 = vmax.f32 %v533_v52, 0.0  ;;  %1388 = vmatpush3.bf16.msra.mxu0 %v1533_v24 }
 0x188   : > { %v595_v57 = vpack.c.bf16 %v583_v54, %v582_v53 }
 0x189   : > { %v594_v58 = vpack.c.bf16 %v581_v56, %v580_v55  ;;  %v1335_v59 = vpop.f32.mrb[8].mxu0  ;;  %1414 = vmatpush3.bf16.msra.mxu1 %v1527_v25  ;;  %v1220_v25 = vld [vmem:[%s2205_s4] ss:$0 sm:$0xff] }
 0x18a   : > { %v554_v60 = vadd.f32 %v1335_v59, %v2083_v30  ;;  %v545_v61 = vpop.f32.mrb[9].mxu0  ;;  %1407 = vmatprep.subr.bf16.mxu1 %v1528_v26 }
 0x18b   : > { %v546_v62 = vadd.f32 %v2083_v30, %v545_v61  ;;  %v1336_v63 = vpop.f32.mrb[10].mxu0  ;;  %1361 = vmatprep.mubr.bf16.mxu1 %v594_v58 }
 0x18c   : > { %v557_v0 = vadd.f32 %v1336_v63, %v2083_v30  ;;  %v548_v1 = vpop.f32.mrb[11].mxu0  ;;  %1362 = vmatmul.mubr.bf16.gmra.mrb[4].mxu1 %v595_v57  ;;  %v586_v3 = vmax.f32 %v554_v60, 0.0 }
 0x18d   : > { %v549_v2 = vadd.f32 %v2083_v30, %v548_v1  ;;  %1415 = vmatpush3.bf16.msra.mxu1 %v1528_v26  ;;  %v584_v5 = vmax.f32 %v546_v62, 0.0 }
 0x18e   : > { %v587_v4 = vmax.f32 %v557_v0, 0.0  ;;  %1408 = vmatprep.subr.bf16.mxu1 %v2068_v27 }
 0x18f   : > { %v585_v6 = vmax.f32 %v549_v2, 0.0 }
 0x190   : > { %v597_v7 = vpack.c.bf16 %v587_v4, %v586_v3 }
 0x191   : > { %v596_v8 = vpack.c.bf16 %v585_v6, %v584_v5  ;;  %v1339_v9 = vpop.f32.mrb[12].mxu0  ;;  %1416 = vmatpush3.bf16.msra.mxu1 %v2068_v27 }
 0x192   : > { %v570_v10 = vadd.f32 %v1339_v9, %v2083_v30  ;;  %v561_v11 = vpop.f32.mrb[13].mxu0  ;;  %1409 = vmatprep.subr.bf16.mxu1 %v2071_v28 }
 0x193   : > { %v562_v12 = vadd.f32 %v2083_v30, %v561_v11  ;;  %v1340_v13 = vpop.f32.mrb[14].mxu0  ;;  %1365 = vmatprep.mubr.bf16.mxu1 %v596_v8 }
 0x194   : > { %v573_v14 = vadd.f32 %v1340_v13, %v2083_v30  ;;  %v564_v15 = vpop.f32.mrb[15].mxu0  ;;  %1366 = vmatmul.mubr.bf16.gmra.mrb[8].mxu1 %v597_v7  ;;  %v590_v17 = vmax.f32 %v570_v10, 0.0 }
 0x195   : > { %v565_v16 = vadd.f32 %v2083_v30, %v564_v15  ;;  %1417 = vmatpush3.bf16.msra.mxu1 %v2071_v28  ;;  %v588_v19 = vmax.f32 %v562_v12, 0.0 }
 0x196   : > { %v591_v18 = vmax.f32 %v573_v14, 0.0  ;;  %1410 = vmatprep.subr.bf16.mxu1 %v2075_v29 }
 0x197   : > { %v589_v20 = vmax.f32 %v565_v16, 0.0 }
 0x198   : > { %v599_v21 = vpack.c.bf16 %v591_v18, %v590_v17  ;;  %v2113_v18 = vld [vmem:[%s2207_s6] ss:$0 sm:$0xff] }
 0x199   : > { %v598_v22 = vpack.c.bf16 %v589_v20, %v588_v19  ;;  %1418 = vmatpush3.bf16.msra.mxu1 %v2075_v29 }
 0x19a   : > { %1411 = vmatprep.subr.bf16.mxu1 %v1532_v23 }
 0x19b   : > { %1369 = vmatprep.mubr.bf16.mxu1 %v598_v22 }
 0x19c   : > { %1370 = vmatmul.mubr.bf16.gmra.mrb[12].mxu1 %v599_v21 }
 0x19d   : > { %1419 = vmatpush3.bf16.msra.mxu1 %v1532_v23 }
 0x19e   : > { %1412 = vmatprep.subr.bf16.mxu1 %v1533_v24 }
 0x1a1   : > { %1420 = vmatpush3.bf16.msra.mxu1 %v1533_v24 }
 0x257   : > { %v1359_v26 = vpop.f32.mrb[0].mxu1 }
 0x258   : > { %v714_v27 = vadd.f32 %v1359_v26, %v1220_v25  ;;  %v705_v28 = vpop.f32.mrb[1].mxu1 }
 0x259   : > { %v706_v29 = vadd.f32 %v1220_v25, %v705_v28  ;;  %v1360_v30 = vpop.f32.mrb[2].mxu1 }
 0x25a   : > { %v717_v31 = vadd.f32 %v1360_v30, %v1220_v25  ;;  %v708_v32 = vpop.f32.mrb[3].mxu1  ;;  %v770_v34 = vmax.f32 %v714_v27, 0.0 }
 0x25b   : > { %v709_v33 = vadd.f32 %v1220_v25, %v708_v32  ;;  %v768_v36 = vmax.f32 %v706_v29, 0.0 }
 0x25c   : > { %v771_v35 = vmax.f32 %v717_v31, 0.0 }
 0x25d   : > { %v769_v37 = vmax.f32 %v709_v33, 0.0 }
 0x25e   : > { %v785_v38 = vpack.c.bf16 %v771_v35, %v770_v34 }
 0x25f   : > { %v784_v39 = vpack.c.bf16 %v769_v37, %v768_v36  ;;  %v1363_v40 = vpop.f32.mrb[4].mxu1 }
 0x260   : > { %v730_v41 = vadd.f32 %v1363_v40, %v1220_v25  ;;  %v721_v42 = vpop.f32.mrb[5].mxu1 }
 0x261   : > { %v722_v43 = vadd.f32 %v1220_v25, %v721_v42  ;;  %v1364_v44 = vpop.f32.mrb[6].mxu1  ;;  %1389 = vmatprep.mubr.bf16.mxu0 %v784_v39 }
 0x262   : > { %v733_v45 = vadd.f32 %v1364_v44, %v1220_v25  ;;  %v724_v46 = vpop.f32.mrb[7].mxu1  ;;  %1390 = vmatmul.mubr.bf16.vlgmr.msra.gmra.mrb[16].mxu0 %v785_v38  ;;  %v774_v48 = vmax.f32 %v730_v41, 0.0 }
 0x263   : > { %v725_v47 = vadd.f32 %v1220_v25, %v724_v46  ;;  %v772_v50 = vmax.f32 %v722_v43, 0.0 }
 0x264   : > { %v775_v49 = vmax.f32 %v733_v45, 0.0 }
 0x265   : > { %v773_v51 = vmax.f32 %v725_v47, 0.0 }
 0x266   : > { %v787_v52 = vpack.c.bf16 %v775_v49, %v774_v48 }
 0x267   : > { %v786_v53 = vpack.c.bf16 %v773_v51, %v772_v50  ;;  %v1367_v54 = vpop.f32.mrb[8].mxu1 }
 0x268   : > { %v746_v55 = vadd.f32 %v1367_v54, %v1220_v25  ;;  %v737_v56 = vpop.f32.mrb[9].mxu1 }
 0x269   : > { %v738_v57 = vadd.f32 %v1220_v25, %v737_v56  ;;  %v1368_v58 = vpop.f32.mrb[10].mxu1  ;;  %1393 = vmatprep.mubr.bf16.mxu0 %v786_v53 }
 0x26a   : > { %v749_v59 = vadd.f32 %v1368_v58, %v1220_v25  ;;  %v740_v60 = vpop.f32.mrb[11].mxu1  ;;  %1394 = vmatmul.mubr.bf16.gmra.mrb[20].mxu0 %v787_v52  ;;  %v778_v62 = vmax.f32 %v746_v55, 0.0 }
 0x26b   : > { %v741_v61 = vadd.f32 %v1220_v25, %v740_v60  ;;  %v776_v0 = vmax.f32 %v738_v57, 0.0 }
 0x26c   : > { %v779_v63 = vmax.f32 %v749_v59, 0.0 }
 0x26d   : > { %v777_v1 = vmax.f32 %v741_v61, 0.0 }
 0x26e   : > { %v789_v2 = vpack.c.bf16 %v779_v63, %v778_v62 }
 0x26f   : > { %v788_v3 = vpack.c.bf16 %v777_v1, %v776_v0  ;;  %v1371_v4 = vpop.f32.mrb[12].mxu1 }
 0x270   : > { %v762_v5 = vadd.f32 %v1371_v4, %v1220_v25  ;;  %v753_v6 = vpop.f32.mrb[13].mxu1 }
 0x271   : > { %v754_v7 = vadd.f32 %v1220_v25, %v753_v6  ;;  %v1372_v8 = vpop.f32.mrb[14].mxu1  ;;  %1397 = vmatprep.mubr.bf16.mxu1 %v788_v3 }
 0x272   : > { %v765_v9 = vadd.f32 %v1372_v8, %v1220_v25  ;;  %v756_v10 = vpop.f32.mrb[15].mxu1  ;;  %1398 = vmatmul.mubr.bf16.vlgmr.msra.gmra.mrb[16].mxu1 %v789_v2  ;;  %v782_v12 = vmax.f32 %v762_v5, 0.0 }
 0x273   : > { %v757_v11 = vadd.f32 %v1220_v25, %v756_v10  ;;  %v780_v14 = vmax.f32 %v754_v7, 0.0 }
 0x274   : > { %v783_v13 = vmax.f32 %v765_v9, 0.0 }
 0x275   : > { %v781_v15 = vmax.f32 %v757_v11, 0.0 }
 0x276   : > { %v791_v16 = vpack.c.bf16 %v783_v13, %v782_v12 }
 0x277   : > { %v790_v17 = vpack.c.bf16 %v781_v15, %v780_v14 }
 0x279   : > { %1401 = vmatprep.mubr.bf16.mxu1 %v790_v17 }
 0x27a   : > { %1402 = vmatmul.mubr.bf16.gmra.mrb[20].mxu1 %v791_v16 }
 0x335   : > { %v1391_v19 = vpop.f32.mrb[16].mxu0 }
 0x336   : > { %v906_v20 = vadd.f32 %v1391_v19, %v2113_v18  ;;  %v897_v21 = vpop.f32.mrb[17].mxu0 }
 0x337   : > { %v898_v22 = vadd.f32 %v2113_v18, %v897_v21  ;;  %v1392_v23 = vpop.f32.mrb[18].mxu0 }
 0x338   : > { %v1240_v24 = vmul.f32 -1.442695, %v906_v20  ;;  %v909_v25 = vadd.f32 %v1392_v23, %v2113_v18  ;;  %v900_v26 = vpop.f32.mrb[19].mxu0 }
 0x339   : > { %v1238_v27 = vmul.f32 -1.442695, %v898_v22  ;;  %v901_v28 = vadd.f32 %v2113_v18, %v900_v26 }
 0x33a   : > { %1534 = vpow2.f32 %v1240_v24  ;;  %v1241_v29 = vmul.f32 -1.442695, %v909_v25 }
 0x33b   : > { %1536 = vpow2.f32 %v1238_v27  ;;  %v1239_v30 = vmul.f32 -1.442695, %v901_v28 }
 0x33c   : > { %1538 = vpow2.f32 %v1241_v29 }
 0x33d   : > { %1540 = vpow2.f32 %v1239_v30  ;;  %v1395_v31 = vpop.f32.mrb[20].mxu0 }
 0x33e   : > { %v922_v32 = vadd.f32 %v1395_v31, %v2113_v18  ;;  %v913_v33 = vpop.f32.mrb[21].mxu0 }
 0x33f   : > { %v914_v34 = vadd.f32 %v2113_v18, %v913_v33  ;;  %v1396_v35 = vpop.f32.mrb[22].mxu0 }
 0x340   : > { %v1244_v36 = vmul.f32 -1.442695, %v922_v32  ;;  %v925_v37 = vadd.f32 %v1396_v35, %v2113_v18  ;;  %v916_v38 = vpop.f32.mrb[23].mxu0 }
 0x341   : > { %v1242_v39 = vmul.f32 -1.442695, %v914_v34  ;;  %v917_v40 = vadd.f32 %v2113_v18, %v916_v38 }
 0x342   : > { %1542 = vpow2.f32 %v1244_v36  ;;  %v1245_v41 = vmul.f32 -1.442695, %v925_v37 }
 0x343   : > { %1544 = vpow2.f32 %v1242_v39  ;;  %v1243_v42 = vmul.f32 -1.442695, %v917_v40 }
 0x344   : > { %v1535_v43 = vpop.eup %1534  ;;  %1546 = vpow2.f32 %v1245_v41 }
 0x345   : > { %v1537_v44 = vpop.eup %1536  ;;  %v1010_v45 = vadd.f32 1.0, %v1535_v43  ;;  %1548 = vpow2.f32 %v1243_v42  ;;  %v1399_v46 = vpop.f32.mrb[16].mxu1 }
 0x346   : > { %v1539_v47 = vpop.eup %1538  ;;  %v1008_v48 = vadd.f32 1.0, %v1537_v44  ;;  %v938_v49 = vadd.f32 %v1399_v46, %v2113_v18  ;;  %v929_v50 = vpop.f32.mrb[17].mxu1 }
 0x347   : > { %v1541_v51 = vpop.eup %1540  ;;  %1550 = vrcp.f32 %v1010_v45  ;;  %v1011_v52 = vadd.f32 1.0, %v1539_v47  ;;  %v930_v53 = vadd.f32 %v2113_v18, %v929_v50  ;;  %v1400_v54 = vpop.f32.mrb[18].mxu1 }
 0x348   : > { %1552 = vrcp.f32 %v1008_v48  ;;  %v1009_v55 = vadd.f32 1.0, %v1541_v51  ;;  %v1248_v56 = vmul.f32 -1.442695, %v938_v49  ;;  %v941_v57 = vadd.f32 %v1400_v54, %v2113_v18  ;;  %v932_v58 = vpop.f32.mrb[19].mxu1 }
 0x349   : > { %1554 = vrcp.f32 %v1011_v52  ;;  %v1246_v59 = vmul.f32 -1.442695, %v930_v53  ;;  %v933_v60 = vadd.f32 %v2113_v18, %v932_v58 }
 0x34a   : > { %1556 = vrcp.f32 %v1009_v55  ;;  %v1249_v61 = vmul.f32 -1.442695, %v941_v57 }
 0x34b   : > { %1558 = vpow2.f32 %v1248_v56  ;;  %v1247_v62 = vmul.f32 -1.442695, %v933_v60 }
 0x34c   : > { %v1543_v63 = vpop.eup %1542  ;;  %1560 = vpow2.f32 %v1246_v59 }
 0x34d   : > { %v1545_v0 = vpop.eup %1544  ;;  %v1014_v1 = vadd.f32 1.0, %v1543_v63  ;;  %1562 = vpow2.f32 %v1249_v61  ;;  %v1403_v2 = vpop.f32.mrb[20].mxu1 }
 0x34e   : > { %v1547_v3 = vpop.eup %1546  ;;  %v1012_v4 = vadd.f32 1.0, %v1545_v0  ;;  %1564 = vpow2.f32 %v1247_v62  ;;  %v954_v5 = vadd.f32 %v1403_v2, %v2113_v18  ;;  %v945_v6 = vpop.f32.mrb[21].mxu1 }
 0x34f   : > { %v1549_v7 = vpop.eup %1548  ;;  %1566 = vrcp.f32 %v1014_v1  ;;  %v1015_v8 = vadd.f32 1.0, %v1547_v3  ;;  %v946_v9 = vadd.f32 %v2113_v18, %v945_v6  ;;  %v1404_v10 = vpop.f32.mrb[22].mxu1 }
 0x350   : > { %1568 = vrcp.f32 %v1012_v4  ;;  %v1013_v11 = vadd.f32 1.0, %v1549_v7  ;;  %v1252_v12 = vmul.f32 -1.442695, %v954_v5  ;;  %v957_v13 = vadd.f32 %v1404_v10, %v2113_v18  ;;  %v948_v14 = vpop.f32.mrb[23].mxu1 }
 0x351   : > { %v1551_v15 = vpop.eup %1550  ;;  %1570 = vrcp.f32 %v1015_v8  ;;  %v1250_v16 = vmul.f32 -1.442695, %v946_v9  ;;  %v949_v17 = vadd.f32 %v2113_v18, %v948_v14 }
 0x352   : > { %v1553_v19 = vpop.eup %1552  ;;  %1058 = vst [vmem:[%s2132_s12 + $0x10] sm:$0xff] %v1551_v15  ;;  %1572 = vrcp.f32 %v1013_v11  ;;  %v1253_v20 = vmul.f32 -1.442695, %v957_v13 }
 0x353   : > { %v1555_v21 = vpop.eup %1554  ;;  %1056 = vst [vmem:[%s2132_s12] sm:$0xff] %v1553_v19  ;;  %1574 = vpow2.f32 %v1252_v12  ;;  %v1251_v22 = vmul.f32 -1.442695, %v949_v17 }
 0x354   : > { %v1557_v23 = vpop.eup %1556  ;;  %1059 = vst [vmem:[%s2132_s12 + $0x18] sm:$0xff] %v1555_v21  ;;  %1576 = vpow2.f32 %v1250_v16 }
 0x355   : > { %v1559_v24 = vpop.eup %1558  ;;  %1057 = vst [vmem:[%s2132_s12 + $0x8] sm:$0xff] %v1557_v23  ;;  %1578 = vpow2.f32 %v1253_v20 }
 0x356   : > { %v1561_v18 = vpop.eup %1560  ;;  %v1018_v25 = vadd.f32 1.0, %v1559_v24  ;;  %1580 = vpow2.f32 %v1251_v22 }
 0x357   : > { %v1563_v26 = vpop.eup %1562  ;;  %v1016_v27 = vadd.f32 1.0, %v1561_v18 }
 0x358   : > { %v1565_v28 = vpop.eup %1564  ;;  %1582 = vrcp.f32 %v1018_v25  ;;  %v1019_v29 = vadd.f32 1.0, %v1563_v26 }
 0x359   : > { %v1567_v30 = vpop.eup %1566  ;;  %1584 = vrcp.f32 %v1016_v27  ;;  %v1017_v31 = vadd.f32 1.0, %v1565_v28 }
 0x35a   : > { %v1569_v32 = vpop.eup %1568  ;;  %1062 = vst [vmem:[%s2132_s12 + $0x30] sm:$0xff] %v1567_v30  ;;  %1586 = vrcp.f32 %v1019_v29 }
 0x35b   : > { %v1571_v33 = vpop.eup %1570  ;;  %1060 = vst [vmem:[%s2132_s12 + $0x20] sm:$0xff] %v1569_v32  ;;  %1588 = vrcp.f32 %v1017_v31 }
 0x35c   : > { %v1573_v34 = vpop.eup %1572  ;;  %1063 = vst [vmem:[%s2132_s12 + $0x38] sm:$0xff] %v1571_v33 }
 0x35d   : > { %v1575_v35 = vpop.eup %1574  ;;  %1061 = vst [vmem:[%s2132_s12 + $0x28] sm:$0xff] %v1573_v34 }
 0x35e   : > { %v1577_v36 = vpop.eup %1576  ;;  %v1022_v37 = vadd.f32 1.0, %v1575_v35 }
 0x35f   : > { %v1579_v38 = vpop.eup %1578  ;;  %v1020_v39 = vadd.f32 1.0, %v1577_v36 }
 0x360   : > { %v1581_v40 = vpop.eup %1580  ;;  %1590 = vrcp.f32 %v1022_v37  ;;  %v1023_v41 = vadd.f32 1.0, %v1579_v38 }
 0x361   : > { %1592 = vrcp.f32 %v1020_v39  ;;  %v1021_v42 = vadd.f32 1.0, %v1581_v40 }
 0x362   : > { %v1583_v43 = vpop.eup %1582  ;;  %1594 = vrcp.f32 %v1023_v41 }
 0x363   : > { %v1585_v44 = vpop.eup %1584  ;;  %1066 = vst [vmem:[%s2132_s12 + $0x50] sm:$0xff] %v1583_v43  ;;  %1596 = vrcp.f32 %v1021_v42 }
 0x364   : > { %v1587_v45 = vpop.eup %1586  ;;  %1064 = vst [vmem:[%s2132_s12 + $0x40] sm:$0xff] %v1585_v44 }
 0x365   : > { %v1589_v46 = vpop.eup %1588  ;;  %1067 = vst [vmem:[%s2132_s12 + $0x58] sm:$0xff] %v1587_v45 }
 0x366   : > { %1065 = vst [vmem:[%s2132_s12 + $0x48] sm:$0xff] %v1589_v46 }
 0x36a   : > { %v1591_v47 = vpop.eup %1590 }
 0x36b   : > { %v1593_v48 = vpop.eup %1592  ;;  %1070 = vst [vmem:[%s2132_s12 + $0x70] sm:$0xff] %v1591_v47 }
 0x36c   : > { %v1595_v49 = vpop.eup %1594  ;;  %1068 = vst [vmem:[%s2132_s12 + $0x60] sm:$0xff] %v1593_v48 }
 0x36d   : > { %v1597_v50 = vpop.eup %1596  ;;  %1071 = vst [vmem:[%s2132_s12 + $0x78] sm:$0xff] %v1595_v49 }
 0x36e   : > { %1069 = vst [vmem:[%s2132_s12 + $0x68] sm:$0xff] %v1597_v50 }
 0x36f   : > { %1725 = shalt.err (!%p1722_p4)
}
 0x370   : > { %s1726_s15 = scalar_lea.hbm %s2152_s11, 2048  ;;  %s1730_s8 = scalar_lea.hbm %s2208_s7, 4096 }
 0x371   : > { %p1727_p9 = scmp.ne.s32.totalorder %s2152_s11, %s1726_s15  ;;  %p1731_p8 = scmp.lt.u32.totalorder %s2152_s11, %s2208_s7 }
 0x372   : > { %p1732_p13 = scmp.lt.u32.totalorder %s1730_s8, %s1726_s15  ;;  %p1734_p10 = scmp.lt.u32.totalorder %s1726_s15, %s2152_s11 }
 0x373   : > { %p1728_p0 = pnand %p1727_p9, %p1991_p5 }
 0x374   : > { %p1733_p6 = por %p1732_p13, %p1731_p8 }
 0x375   : > { %p1729_p11 = pneg %p1728_p0 }
 0x376   : > { %p1735_p3 = por %p1734_p10, %p1733_p6 }
 0x378   : > { %p1736_p7 = pnand %p1735_p3, %p1729_p11 }
 0x37a   : > { %1739 = shalt.err (!%p1736_p7)
}
 0x37b   : > { %s1795_s29 = smov 128   ;;  %s1796_s23 = smov 8  }
 0x37c   : > { %1435 = dma.vmem_to_hbm [thread:$0]  (%p1991_p5), %s2154_s16, 2048, %s2152_s11, %s1073_s28, %s1795_s29, %s1795_s29, %s1796_s23  }
 0x37d PF: > { %s2228_s20 = sld [smem:[#allocation15_spill]]  ;;  %s1101_s30 = sand.u32 1, %s1774_s24  }
 0x37e   : > { %p2230_p1 = scmp.ge.s32.totalorder %s1786_s27, 2  ;;  %s1102_s9 = scalar_lea.sflag [#allocation4], %s1101_s30 }
 0x383   : > { %p2229_p12 = scmp.ne.s32.totalorder %s2228_s20, 0 }
 0x385   : > { %p1452_p2 = pnand %p2230_p1, %p2229_p12 }
 0x387   : > { %1769 = dma.done.wait (!%p1452_p2), %s1102_s9, 2048  }
 0x388   : > { %1771 = vsyncadd (!%p1452_p2), %s1102_s9, 4294965248  ;;  %p22_p4 = scmp.ge.s32.totalorder %s1977_s22, 4   ;;  %s2231_s24 = smov %s1778_s25 }
 0x389   : > { %s2232_s25 = smov %s1782_s26  ;;  %s2233_s26 = smov %s1987_s18 }
 0x38a   : > { %s2234_s27 = smov %s1977_s22  ;;  %24 = sbr.rel (!%p22_p4) target bundleno = 7 (0x7), region = 105 }
 0x391   :  { %1107 = vsyncpa [#allocation3], 1 }
 0x392   :  { %1109 = vsyncpa [#allocation3 + $0x1], 1 }
 0x393   :  { %1110 = vsyncpa [#allocation6], 1 }
 0x394   :  { %1111 = vsyncpa [#allocation9], 1 }
 0x395   :  { %1112 = vsyncpa [#allocation4], 1 }
 0x396   :  { %1114 = vsyncpa [#allocation4 + $0x1], 1 }

// kernel: tpu_custom_call.1
= control target key start
LH: loop header
LB: loop body
LE: loop exit
PB: predicated region body
PF: predicated region fallthrough
CT: control target
= control target key end

     0   :  { %12 = vsyncpa [#allocation3], 0  ;;  %s2201_s0 = inlined_call_operand.hbm [shape: bf16[256,128], index: 0, kind: input, shape index: {}]   ;;  %s2202_s1 = inlined_call_operand.hbm [shape: bf16[128,128], index: 1, kind: input, shape index: {}]   ;;  %s2203_s2 = inlined_call_operand.vmem [shape: f32[1,128], index: 2, kind: input, shape index: {}]   ;;  %s2204_s3 = inlined_call_operand.hbm [shape: bf16[128,128], index: 3, kind: input, shape index: {}]   ;;  %s2205_s4 = inlined_call_operand.vmem [shape: f32[1,128], index: 4, kind: input, shape index: {}]   ;;  %s2206_s5 = inlined_call_operand.hbm [shape: bf16[128,128], index: 5, kind: input, shape index: {}]   ;;  %s2207_s6 = inlined_call_operand.vmem [shape: f32[1,128], index: 6, kind: input, shape index: {}]   ;;  %s2208_s7 = inlined_call_operand.hbm [shape: f32[256,128], index: 7, kind: output, shape index: {}]  }
   0x1   :  { %14 = vsyncpa [#allocation3 + $0x1], 0 }
   0x2   :  { %15 = vsyncpa [#allocation6], 0 }
   0x3   :  { %16 = vsyncpa [#allocation9], 0 }
   0x4   :  { %17 = vsyncpa [#allocation4], 0 }
   0x5   :  { %19 = vsyncpa [#allocation4 + $0x1], 0  ;;  %s1837_s24 = smov 0   ;;  %s1839_s25 = smov 0  }
   0x6   :  { %s1841_s26 = smov 0   ;;  %s1843_s27 = smov 0  }
   0x7 LB: > { %s1858_s28 = sadd.s32 4294967295, %s1786_s27   ;;  %s1188_s29 = sadd.s32 4294967294, %s1786_s27   ;;  %s1786_s27 = sphi %s1843_s27, %s2234_s27   ;;  %s1782_s26 = sphi %s1841_s26, %s2233_s26   ;;  %s1778_s25 = sphi %s1839_s25, %s2232_s25   ;;  %s1774_s24 = sphi %s1837_s24, %s2231_s24  }
   0x8   : > { %p45_p0 = scmp.ne.s32.totalorder %s1778_s25, %s1774_s24  ;;  %p2209_p1 = scmp.eq.s32.totalorder %s1858_s28, 0 }
   0x9   : > { %p201_p3 = scmp.eq.s32.totalorder %s1188_s29, 1  ;;  %p1189_p5 = scmp.ge.s32.totalorder %s1786_s27, 1 }
   0xa   : > { %p1867_p4 = por %p2209_p1, %p45_p0  ;;  %p208_p7 = scmp.lt.s32.totalorder %s1786_s27, 3 }
   0xb   : > { %p1872_p6 = por %p201_p3, %p45_p0  ;;  %s1788_s10 = smov [#allocation5]  }
   0xc   : > { %s2213_s30 = scalar_select %p1867_p4, 1, 0 }
   0xd   : > { %s2214_s8 = scalar_select %p1872_p6, 1, 0 }
   0xe   : > { %p1877_p8 = pnand %p1189_p5, %p208_p7  ;;  %s220_s11 = sshll.u32 %s1788_s10, 4  ;;  %s1881_s11 = int_to_ptr.vmem [resolvable:$true] %s220_s11 }
   0xf   : > { %2215 = sst [smem:[#allocation15_spill]] %s2214_s8  ;;  %s1789_s13 = smov [#allocation7]  }
  0x10   : > { %s2216_s9 = scalar_select %p1877_p8, 1, 0 }
  0x11   : > { %p1437_p9 = pneg %p1877_p8  ;;  %s236_s14 = sshll.u32 %s1789_s13, 4  ;;  %s1892_s14 = int_to_ptr.vmem [resolvable:$true] %s236_s14 }
  0x12   : > { %s1790_s15 = smov [#allocation8]   ;;  %s1598_s19 = scalar_lea.hbm %s2202_s1, 1024 }
  0x13   : > { %p1888_p11 = pnand %p1437_p9, %p2209_p1  ;;  %s1894_s16 = sshll.u32 %s1790_s15, 4  ;;  %s253_s16 = int_to_ptr.vmem [resolvable:$true] %s1894_s16 }
  0x14   : > { %p1599_p12 = scmp.ne.s32.totalorder %s2202_s1, %s1598_s19  ;;  %p1605_p5 = scmp.lt.u32.totalorder %s1598_s19, %s2202_s1 }
  0x15   : > { %p1904_p13 = pneg %p1888_p11 }
  0x17   : > { %p1601_p0 = pnand %p1904_p13, %p1599_p12 }
  0x19   : > { %p1602_p3 = pneg %p1601_p0 }
  0x1b   : > { %p1607_p7 = pnand %p1605_p5, %p1602_p3 }
  0x1d   : > { %1610 = shalt.err (!%p1607_p7)
}
  0x1e   : > { %s1611_s10 = scalar_lea.vmem %s1881_s11, 1024  ;;  %p1619_p2 = scmp.lt.s32.totalorder %s1881_s11, %s1881_s11 }
  0x1f   : > { %p1612_p9 = scmp.ne.s32.totalorder %s1881_s11, %s1611_s10  ;;  %p1620_p6 = scmp.lt.s32.totalorder %s1611_s10, %s1611_s10 }
  0x21   : > { %p1614_p10 = pnand %p1612_p9, %p1904_p13  ;;  %p1621_p12 = por %p1620_p6, %p1619_p2 }
  0x23   : > { %p1615_p1 = pneg %p1614_p10 }
  0x25   : > { %p1622_p0 = pnand %p1621_p12, %p1615_p1 }
  0x27   : > { %1625 = shalt.err (!%p1622_p0)
}
  0x28   : > { %s1791_s13 = smov 64   ;;  %s1792_s15 = smov 4  }
  0x29   : > { %1440 = dma.hbm_to_vmem [thread:$0]  (!%p1888_p11), %s2202_s1, 1024, %s1881_s11, [#allocation6], %s1791_s13, %s1791_s13, %s1792_s15  }
  0x2a   : > { %s1626_s21 = scalar_lea.hbm %s2204_s3, 1024 }
  0x2b   : > { %p1627_p1 = scmp.ne.s32.totalorder %s2204_s3, %s1626_s21  ;;  %p1633_p10 = scmp.lt.u32.totalorder %s1626_s21, %s2204_s3 }
  0x2d   : > { %p1629_p2 = pnand %p1627_p1, %p1904_p13 }
  0x2f   : > { %p1630_p6 = pneg %p1629_p2 }
  0x31   : > { %p1635_p3 = pnand %p1633_p10, %p1630_p6 }
  0x33   : > { %1638 = shalt.err (!%p1635_p3)
}
  0x34   : > { %s1639_s11 = scalar_lea.vmem %s1892_s14, 1024  ;;  %p1647_p12 = scmp.lt.s32.totalorder %s1892_s14, %s1892_s14 }
  0x35   : > { %p1640_p5 = scmp.ne.s32.totalorder %s1892_s14, %s1639_s11  ;;  %p1648_p0 = scmp.lt.s32.totalorder %s1639_s11, %s1639_s11 }
  0x37   : > { %p1642_p7 = pnand %p1640_p5, %p1904_p13  ;;  %p1649_p1 = por %p1648_p0, %p1647_p12 }
  0x39   : > { %p1643_p9 = pneg %p1642_p7 }
  0x3b   : > { %p1650_p2 = pnand %p1649_p1, %p1643_p9 }
  0x3d   : > { %1653 = shalt.err (!%p1650_p2)
}
  0x3e   : > { %1443 = dma.hbm_to_vmem [thread:$0]  (!%p1888_p11), %s2204_s3, 1024, %s1892_s14, [#allocation6], %s1791_s13, %s1791_s13, %s1792_s15  }
  0x3f   : > { %s1654_s20 = scalar_lea.hbm %s2206_s5, 1024 }
  0x40   : > { %p1655_p6 = scmp.ne.s32.totalorder %s2206_s5, %s1654_s20  ;;  %p1661_p5 = scmp.lt.u32.totalorder %s1654_s20, %s2206_s5 }
  0x42   : > { %p1657_p10 = pnand %p1655_p6, %p1904_p13 }
  0x44   : > { %p1658_p3 = pneg %p1657_p10 }
  0x46   : > { %p1663_p7 = pnand %p1661_p5, %p1658_p3 }
  0x48   : > { %1666 = shalt.err (!%p1663_p7)
}
  0x49   : > { %s1667_s11 = scalar_lea.vmem %s253_s16, 1024  ;;  %p1675_p1 = scmp.lt.s32.totalorder %s253_s16, %s253_s16 }
  0x4a   : > { %p1668_p9 = scmp.ne.s32.totalorder %s253_s16, %s1667_s11  ;;  %p1676_p2 = scmp.lt.s32.totalorder %s1667_s11, %s1667_s11 }
  0x4c   : > { %p1670_p12 = pnand %p1668_p9, %p1904_p13  ;;  %p1677_p4 = por %p1676_p2, %p1675_p1 }
  0x4e   : > { %p1671_p0 = pneg %p1670_p12 }
  0x50   : > { %p1678_p8 = pnand %p1677_p4, %p1671_p0 }
  0x52   : > { %1681 = shalt.err (!%p1678_p8)
}
  0x53   : > { %1446 = dma.hbm_to_vmem [thread:$0]  (!%p1888_p11), %s2206_s5, 1024, %s253_s16, [#allocation9], %s1791_s13, %s1791_s13, %s1792_s15  }
  0x54   : > { %s1977_s22 = sadd.s32 1, %s1786_s27   ;;  %s32_s17 = sadd.s32 1, %s1782_s26 }
  0x55   : > { %s29_s12 = ssub.s32 %s1786_s27, %s1977_s22  ;;  %p39_p8 = scmp.ne.s32.totalorder %s1782_s26, %s1778_s25 }
  0x56   : > { %p30_p4 = scmp.eq.s32.totalorder %s29_s12, 0  ;;  %p40_p13 = scmp.eq.s32.totalorder %s1786_s27, 0 }
  0x57   : > { %p1458_p6 = scmp.lt.s32.totalorder %s1786_s27, 2  ;;  %p2219_p3 = scmp.eq.s32.totalorder %s1858_s28, 1 }
  0x58   : > { %s1987_s18 = scalar_select %p30_p4, %s1782_s26, %s32_s17  }
  0x59   : > { %p41_p10 = por %p40_p13, %p39_p8  ;;  %p1991_p5 = por %p2219_p3, %p39_p8 }
  0x5a   : > { %s269_s20 = sand.u32 1, %s1782_s26   ;;  %s1259_s21 = sshll.u32 %s1786_s27, 10 }
  0x5b   : > { %s1194_s16 = sshll.u32 %s269_s20, 6  ;;  %s2000_s10 = scalar_lea.hbm %s2201_s0, %s1259_s21 }
  0x5c   : > { %s273_s11 = scalar_lea.vmem [#allocation2], %s1194_s16  ;;  %p2002_p11 = pnand %p1458_p6, %p41_p10 }
  0x5d   : > { %s280_s14 = sshll.u32 %s273_s11, 4  ;;  %s2008_s12 = scalar_lea.sflag [#allocation3], %s269_s20  ;;  %s2006_s14 = int_to_ptr.vmem [resolvable:$true] %s280_s14 }
  0x5e   : > { %s1682_s17 = scalar_lea.hbm %s2000_s10, 1024  ;;  %p1684_p9 = pneg %p2002_p11 }
  0x5f   : > { %p1683_p7 = scmp.ne.s32.totalorder %s2000_s10, %s1682_s17  ;;  %s1687_s23 = scalar_lea.hbm %s2201_s0, 2048 }
  0x60   : > { %p1688_p1 = scmp.lt.u32.totalorder %s2000_s10, %s2201_s0  ;;  %p1689_p2 = scmp.lt.u32.totalorder %s1687_s23, %s1682_s17 }
  0x61   : > { %p1685_p12 = pnand %p1684_p9, %p1683_p7  ;;  %p1691_p8 = scmp.lt.u32.totalorder %s1682_s17, %s2000_s10 }
  0x62   : > { %p1690_p4 = por %p1689_p2, %p1688_p1 }
  0x63   : > { %p1686_p0 = pneg %p1685_p12 }
  0x64   : > { %p1692_p13 = por %p1691_p8, %p1690_p4 }
  0x66   : > { %p1693_p6 = pnand %p1692_p13, %p1686_p0 }
  0x68   : > { %1696 = shalt.err (!%p1693_p6)
}
  0x69   : > { %s1697_s20 = scalar_lea.vmem %s2006_s14, 1024  ;;  %s1793_s21 = smov [#allocation2]  }
  0x6a   : > { %p1698_p10 = scmp.ne.s32.totalorder %s2006_s14, %s1697_s20  ;;  %s1702_s16 = sshll.u32 %s1793_s21, 4  ;;  %s1703_s16 = int_to_ptr.vmem [resolvable:$false] %s1702_s16 }
  0x6b   : > { %s1704_s29 = scalar_lea.vmem %s1703_s16, 2048  ;;  %p1705_p12 = scmp.lt.s32.totalorder %s2006_s14, %s1703_s16 }
  0x6c   : > { %p1700_p3 = pnand %p1698_p10, %p1684_p9  ;;  %p1706_p1 = scmp.lt.s32.totalorder %s1704_s29, %s1697_s20 }
  0x6e   : > { %p1701_p7 = pneg %p1700_p3  ;;  %p1707_p2 = por %p1706_p1, %p1705_p12 }
  0x70   : > { %p1708_p4 = pnand %p1707_p2, %p1701_p7 }
  0x72   : > { %1711 = shalt.err (!%p1708_p4)
}
  0x73   : > { %1450 = dma.hbm_to_vmem [thread:$0]  (!%p2002_p11), %s2000_s10, 1024, %s2006_s14, %s2008_s12, %s1791_s13, %s1791_s13, %s1792_s15  }
  0x74   : > { %p2222_p9 = scmp.ne.s32.totalorder %s2216_s9, 0 }
  0x75   : > { %s2042_s17 = sand.u32 (!%p2222_p9), 1, %s1778_s25   ;;  %p2223_p0 = scmp.ne.s32.totalorder (!%p2222_p9), %s2213_s30, 0 }
  0x76   : > { %292 = sbr.rel (%p2222_p9) target bundleno = 893 (0x37d), region = 48  ;;  %s1198_s23 = sshll.u32 (!%p2222_p9), %s2042_s17, 6 }
  0x77   : > { %s295_s11 = scalar_lea.sflag (!%p2222_p9), [#allocation3], %s2042_s17  ;;  %s2046_s20 = scalar_lea.vmem (!%p2222_p9), [#allocation2], %s1198_s23 }
  0x7d   : > { %1757 = dma.done.wait (%p2223_p0), %s295_s11, 1024  }
  0x7e   : > { %1759 = vsyncadd (%p2223_p0), %s295_s11, 4294966272  ;;  %p2224_p11 = scmp.eq.s32.totalorder %s1858_s28, 0 }
  0x80   : > { %1761 = dma.done.wait (%p2224_p11), [#allocation6], 2048   ;;  %p2225_p8 = pmov %p2224_p11 }
  0x82   : > { %1763 = vsyncadd (%p2225_p8), [#allocation6], 4294965248  ;;  %p2226_p13 = pmov %p2225_p8 }
  0x83   : > { %p2227_p6 = pmov %p2225_p8 }
  0x84   : > { %1765 = dma.done.wait (%p2226_p13), [#allocation9], 1024  }
  0x85   : > { %1767 = vsyncadd (%p2227_p6), [#allocation9], 4294966272  ;;  %v1502_v0 = vld [vmem:[#allocation5] sm:$0xff]   ;;  %v1503_v1 = vld [vmem:[#allocation5 + $0x8] sm:$0xff]   ;;  %s1202_s8 = sshll.u32 %s2042_s17, 7  ;;  %s1260_s21 = sshll.u32 %s1858_s28, 11 }
  0x86   : > { %1309 = vmatprep.subr.bf16.mxu0 %v1502_v0  ;;  %v1504_v2 = vld [vmem:[#allocation5 + $0x10] sm:$0xff]   ;;  %v1505_v3 = vld [vmem:[#allocation5 + $0x18] sm:$0xff]   ;;  %v1510_v4 = vld [vmem:[%s2046_s20] sm:$0xff]   ;;  %s2132_s12 = scalar_lea.vmem [#allocation10], %s1202_s8  ;;  %s2152_s11 = scalar_lea.hbm %s2208_s7, %s1260_s21 }
  0x87   : > { %1310 = vmatpush3.bf16.msra.mxu0 %v1502_v0  ;;  %1325 = vmatprep.mubr.bf16.mxu0 %v1510_v4  ;;  %v1506_v5 = vld [vmem:[#allocation5 + $0x20] sm:$0xff]   ;;  %v1507_v6 = vld [vmem:[#allocation5 + $0x28] sm:$0xff]   ;;  %v1508_v9 = vld [vmem:[#allocation5 + $0x30] sm:$0xff]   ;;  %s1086_s16 = sshll.u32 %s2132_s12, 4  ;;  %s1073_s28 = scalar_lea.sflag [#allocation4], %s2042_s17  ;;  %s2154_s16 = int_to_ptr.vmem [resolvable:$true] %s1086_s16 }
  0x88   : > { %1311 = vmatprep.subr.bf16.mxu0 %v1503_v1  ;;  %v1518_v7 = vld [vmem:[#allocation7] sm:$0xff]   ;;  %v1519_v8 = vld [vmem:[#allocation7 + $0x8] sm:$0xff]   ;;  %v1520_v10 = vld [vmem:[#allocation7 + $0x10] sm:$0xff]   ;;  %s1794_s30 = smov [#allocation10]  }
  0x89   : > { %1341 = vmatprep.subr.bf16.mxu1 %v1518_v7  ;;  %v1509_v11 = vld [vmem:[#allocation5 + $0x38] sm:$0xff]   ;;  %v1522_v13 = vld [vmem:[#allocation7 + $0x20] sm:$0xff]   ;;  %v1511_v14 = vld [vmem:[%s2046_s20 + $0x8] sm:$0xff]   ;;  %s1716_s9 = sshll.u32 %s1794_s30, 4  ;;  %s1717_s9 = int_to_ptr.vmem [resolvable:$false] %s1716_s9 }
  0x8a   : > { %1342 = vmatpush3.bf16.msra.mxu1 %v1518_v7  ;;  %v1521_v12 = vld [vmem:[#allocation7 + $0x18] sm:$0xff]   ;;  %v1512_v15 = vld [vmem:[%s2046_s20 + $0x10] sm:$0xff]   ;;  %v1523_v16 = vld [vmem:[#allocation7 + $0x28] sm:$0xff]   ;;  %s1718_s13 = scalar_lea.vmem %s1717_s9, 4096  ;;  %p1719_p12 = scmp.lt.s32.totalorder %s2154_s16, %s1717_s9 }
  0x8b   : > { %1312 = vmatpush3.bf16.msra.mxu0 %v1503_v1  ;;  %1343 = vmatprep.subr.bf16.mxu1 %v1519_v8  ;;  %v1513_v17 = vld [vmem:[%s2046_s20 + $0x18] sm:$0xff]   ;;  %v1514_v18 = vld [vmem:[%s2046_s20 + $0x20] sm:$0xff]   ;;  %v1515_v19 = vld [vmem:[%s2046_s20 + $0x28] sm:$0xff]  }
  0x8c   : > { %1313 = vmatprep.subr.bf16.mxu0 %v1504_v2  ;;  %v1516_v20 = vld [vmem:[%s2046_s20 + $0x30] sm:$0xff]   ;;  %v1517_v21 = vld [vmem:[%s2046_s20 + $0x38] sm:$0xff]   ;;  %v1526_v24 = vld [vmem:[#allocation8] sm:$0xff]   ;;  %s1712_s20 = scalar_lea.vmem %s2154_s16, 2048 }
  0x8d   : > { %v1524_v22 = vld [vmem:[#allocation7 + $0x30] sm:$0xff]   ;;  %v1525_v23 = vld [vmem:[#allocation7 + $0x38] sm:$0xff]   ;;  %v1527_v25 = vld [vmem:[#allocation8 + $0x8] sm:$0xff]   ;;  %p1713_p10 = scmp.ne.s32.totalorder %s2154_s16, %s1712_s20  ;;  %p1720_p1 = scmp.lt.s32.totalorder %s1718_s13, %s1712_s20 }
  0x8e   : > { %1344 = vmatpush3.bf16.msra.mxu1 %v1519_v8  ;;  %v1528_v26 = vld [vmem:[#allocation8 + $0x10] sm:$0xff]   ;;  %v2068_v27 = vld [vmem:[#allocation8 + $0x18] sm:$0xff]   ;;  %v2071_v28 = vld [vmem:[#allocation8 + $0x20] sm:$0xff]  }
  0x8f   : > { %1314 = vmatpush3.bf16.msra.mxu0 %v1504_v2  ;;  %1345 = vmatprep.subr.bf16.mxu1 %v1520_v10  ;;  %v2075_v29 = vld [vmem:[#allocation8 + $0x28] sm:$0xff]   ;;  %v2083_v30 = vld [vmem:[%s2203_s2] ss:$0 sm:$0xff]  ;;  %p1714_p3 = pnand %p1713_p10, %p1991_p5  ;;  %p1721_p2 = por %p1720_p1, %p1719_p12 }
  0x90   : > { %1315 = vmatprep.subr.bf16.mxu0 %v1505_v3 }
  0x91   : > { %p1715_p7 = pneg %p1714_p3 }
  0x92   : > { %1346 = vmatpush3.bf16.msra.mxu1 %v1520_v10 }
  0x93   : > { %1316 = vmatpush3.bf16.msra.mxu0 %v1505_v3  ;;  %1347 = vmatprep.subr.bf16.mxu1 %v1521_v12  ;;  %p1722_p4 = pnand %p1721_p2, %p1715_p7 }
  0x94   : > { %1317 = vmatprep.subr.bf16.mxu0 %v1506_v5 }
  0x96   : > { %1348 = vmatpush3.bf16.msra.mxu1 %v1521_v12 }
  0x97   : > { %1318 = vmatpush3.bf16.msra.mxu0 %v1506_v5  ;;  %1349 = vmatprep.subr.bf16.mxu1 %v1522_v13 }
  0x98   : > { %1319 = vmatprep.subr.bf16.mxu0 %v1507_v6 }
  0x9a   : > { %1350 = vmatpush3.bf16.msra.mxu1 %v1522_v13 }
  0x9b   : > { %1320 = vmatpush3.bf16.msra.mxu0 %v1507_v6  ;;  %1351 = vmatprep.subr.bf16.mxu1 %v1523_v16 }
  0x9c   : > { %1321 = vmatprep.subr.bf16.mxu0 %v1508_v9 }
  0x9e   : > { %1352 = vmatpush3.bf16.msra.mxu1 %v1523_v16 }
  0x9f   : > { %1322 = vmatpush3.bf16.msra.mxu0 %v1508_v9  ;;  %1353 = vmatprep.subr.bf16.mxu1 %v1524_v22 }
  0xa0   : > { %1323 = vmatprep.subr.bf16.mxu0 %v1509_v11 }
  0xa2   : > { %1354 = vmatpush3.bf16.msra.mxu1 %v1524_v22 }
  0xa3   : > { %1324 = vmatpush3.bf16.msra.mxu0 %v1509_v11  ;;  %1355 = vmatprep.subr.bf16.mxu1 %v1525_v23 }
  0xa4   : > { %1373 = vmatprep.subr.bf16.mxu0 %v1526_v24 }
  0xa6   : > { %1326 = vmatmul.mubr.bf16.vlgmr.msra.gmra.mrb[0].mxu0 %v1511_v14  ;;  %1356 = vmatpush3.bf16.msra.mxu1 %v1525_v23  ;;  %v1532_v23 = vld [vmem:[#allocation8 + $0x30] sm:$0xff]  }
  0xa7   : > { %1329 = vmatprep.mubr.bf16.mxu0 %v1512_v15  ;;  %1405 = vmatprep.subr.bf16.mxu1 %v1526_v24 }
  0xa8   : > { %1374 = vmatpush3.bf16.msra.mxu0 %v1526_v24 }
  0xa9   : > { %1375 = vmatprep.subr.bf16.mxu0 %v1527_v25 }
  0xac   : > { %1376 = vmatpush3.bf16.msra.mxu0 %v1527_v25 }
  0xad   : > { %1377 = vmatprep.subr.bf16.mxu0 %v1528_v26 }
  0xae   : > { %1330 = vmatmul.mubr.bf16.gmra.mrb[4].mxu0 %v1513_v17 }
  0xaf   : > { %1333 = vmatprep.mubr.bf16.mxu0 %v1514_v18 }
  0xb0   : > { %1378 = vmatpush3.bf16.msra.mxu0 %v1528_v26 }
  0xb1   : > { %1379 = vmatprep.subr.bf16.mxu0 %v2068_v27 }
  0xb4   : > { %1380 = vmatpush3.bf16.msra.mxu0 %v2068_v27 }
  0xb5   : > { %1381 = vmatprep.subr.bf16.mxu0 %v2071_v28 }
  0xb6   : > { %1334 = vmatmul.mubr.bf16.gmra.mrb[8].mxu0 %v1515_v19 }
  0xb7   : > { %1337 = vmatprep.mubr.bf16.mxu0 %v1516_v20 }
  0xb8   : > { %1382 = vmatpush3.bf16.msra.mxu0 %v2071_v28 }
  0xb9   : > { %1383 = vmatprep.subr.bf16.mxu0 %v2075_v29 }
  0xbc   : > { %1384 = vmatpush3.bf16.msra.mxu0 %v2075_v29 }
  0xbd   : > { %1385 = vmatprep.subr.bf16.mxu0 %v1532_v23 }
  0xbe   : > { %1338 = vmatmul.mubr.bf16.gmra.mrb[12].mxu0 %v1517_v21 }
  0xc0   : > { %1386 = vmatpush3.bf16.msra.mxu0 %v1532_v23 }
 0x179   : > { %v1327_v31 = vpop.f32.mrb[0].mxu0 }
 0x17a   : > { %v522_v32 = vadd.f32 %v1327_v31, %v2083_v30  ;;  %v513_v33 = vpop.f32.mrb[1].mxu0 }
 0x17b   : > { %v514_v34 = vadd.f32 %v2083_v30, %v513_v33  ;;  %v1328_v35 = vpop.f32.mrb[2].mxu0 }
 0x17c   : > { %v525_v36 = vadd.f32 %v1328_v35, %v2083_v30  ;;  %v516_v37 = vpop.f32.mrb[3].mxu0  ;;  %v578_v39 = vmax.f32 %v522_v32, 0.0 }
 0x17d   : > { %v517_v38 = vadd.f32 %v2083_v30, %v516_v37  ;;  %v576_v41 = vmax.f32 %v514_v34, 0.0 }
 0x17e   : > { %v579_v40 = vmax.f32 %v525_v36, 0.0 }
 0x17f   : > { %v577_v42 = vmax.f32 %v517_v38, 0.0 }
 0x180   : > { %v593_v43 = vpack.c.bf16 %v579_v40, %v578_v39 }
 0x181   : > { %v1331_v44 = vpop.f32.mrb[4].mxu0  ;;  %v592_v45 = vpack.c.bf16 %v577_v42, %v576_v41 }
 0x182   : > { %v538_v46 = vadd.f32 %v1331_v44, %v2083_v30  ;;  %v529_v47 = vpop.f32.mrb[5].mxu0 }
 0x183   : > { %v530_v48 = vadd.f32 %v2083_v30, %v529_v47  ;;  %v1332_v49 = vpop.f32.mrb[6].mxu0  ;;  %1357 = vmatprep.mubr.bf16.mxu1 %v592_v45 }
 0x184   : > { %v541_v50 = vadd.f32 %v1332_v49, %v2083_v30  ;;  %v532_v51 = vpop.f32.mrb[7].mxu0  ;;  %1358 = vmatmul.mubr.bf16.vlgmr.msra.gmra.mrb[0].mxu1 %v593_v43  ;;  %v582_v53 = vmax.f32 %v538_v46, 0.0 }
 0x185   : > { %v533_v52 = vadd.f32 %v2083_v30, %v532_v51  ;;  %1413 = vmatpush3.bf16.msra.mxu1 %v1526_v24  ;;  %v580_v55 = vmax.f32 %v530_v48, 0.0  ;;  %v1533_v24 = vld [vmem:[#allocation8 + $0x38] sm:$0xff]  }
 0x186   : > { %v583_v54 = vmax.f32 %v541_v50, 0.0  ;;  %1406 = vmatprep.subr.bf16.mxu1 %v1527_v25  ;;  %1387 = vmatprep.subr.bf16.mxu0 %v1533_v24 }
 0x187   : > { %v581_v56 = vmax.f32 %v533_v52, 0.0  ;;  %1388 = vmatpush3.bf16.msra.mxu0 %v1533_v24 }
 0x188   : > { %v595_v57 = vpack.c.bf16 %v583_v54, %v582_v53 }
 0x189   : > { %v594_v58 = vpack.c.bf16 %v581_v56, %v580_v55  ;;  %v1335_v59 = vpop.f32.mrb[8].mxu0  ;;  %1414 = vmatpush3.bf16.msra.mxu1 %v1527_v25  ;;  %v1220_v25 = vld [vmem:[%s2205_s4] ss:$0 sm:$0xff] }
 0x18a   : > { %v554_v60 = vadd.f32 %v1335_v59, %v2083_v30  ;;  %v545_v61 = vpop.f32.mrb[9].mxu0  ;;  %1407 = vmatprep.subr.bf16.mxu1 %v1528_v26 }
 0x18b   : > { %v546_v62 = vadd.f32 %v2083_v30, %v545_v61  ;;  %v1336_v63 = vpop.f32.mrb[10].mxu0  ;;  %1361 = vmatprep.mubr.bf16.mxu1 %v594_v58 }
 0x18c   : > { %v557_v0 = vadd.f32 %v1336_v63, %v2083_v30  ;;  %v548_v1 = vpop.f32.mrb[11].mxu0  ;;  %1362 = vmatmul.mubr.bf16.gmra.mrb[4].mxu1 %v595_v57  ;;  %v586_v3 = vmax.f32 %v554_v60, 0.0 }
 0x18d   : > { %v549_v2 = vadd.f32 %v2083_v30, %v548_v1  ;;  %1415 = vmatpush3.bf16.msra.mxu1 %v1528_v26  ;;  %v584_v5 = vmax.f32 %v546_v62, 0.0 }
 0x18e   : > { %v587_v4 = vmax.f32 %v557_v0, 0.0  ;;  %1408 = vmatprep.subr.bf16.mxu1 %v2068_v27 }
 0x18f   : > { %v585_v6 = vmax.f32 %v549_v2, 0.0 }
 0x190   : > { %v597_v7 = vpack.c.bf16 %v587_v4, %v586_v3 }
 0x191   : > { %v596_v8 = vpack.c.bf16 %v585_v6, %v584_v5  ;;  %v1339_v9 = vpop.f32.mrb[12].mxu0  ;;  %1416 = vmatpush3.bf16.msra.mxu1 %v2068_v27 }
 0x192   : > { %v570_v10 = vadd.f32 %v1339_v9, %v2083_v30  ;;  %v561_v11 = vpop.f32.mrb[13].mxu0  ;;  %1409 = vmatprep.subr.bf16.mxu1 %v2071_v28 }
 0x193   : > { %v562_v12 = vadd.f32 %v2083_v30, %v561_v11  ;;  %v1340_v13 = vpop.f32.mrb[14].mxu0  ;;  %1365 = vmatprep.mubr.bf16.mxu1 %v596_v8 }
 0x194   : > { %v573_v14 = vadd.f32 %v1340_v13, %v2083_v30  ;;  %v564_v15 = vpop.f32.mrb[15].mxu0  ;;  %1366 = vmatmul.mubr.bf16.gmra.mrb[8].mxu1 %v597_v7  ;;  %v590_v17 = vmax.f32 %v570_v10, 0.0 }
 0x195   : > { %v565_v16 = vadd.f32 %v2083_v30, %v564_v15  ;;  %1417 = vmatpush3.bf16.msra.mxu1 %v2071_v28  ;;  %v588_v19 = vmax.f32 %v562_v12, 0.0 }
 0x196   : > { %v591_v18 = vmax.f32 %v573_v14, 0.0  ;;  %1410 = vmatprep.subr.bf16.mxu1 %v2075_v29 }
 0x197   : > { %v589_v20 = vmax.f32 %v565_v16, 0.0 }
 0x198   : > { %v599_v21 = vpack.c.bf16 %v591_v18, %v590_v17  ;;  %v2113_v18 = vld [vmem:[%s2207_s6] ss:$0 sm:$0xff] }
 0x199   : > { %v598_v22 = vpack.c.bf16 %v589_v20, %v588_v19  ;;  %1418 = vmatpush3.bf16.msra.mxu1 %v2075_v29 }
 0x19a   : > { %1411 = vmatprep.subr.bf16.mxu1 %v1532_v23 }
 0x19b   : > { %1369 = vmatprep.mubr.bf16.mxu1 %v598_v22 }
 0x19c   : > { %1370 = vmatmul.mubr.bf16.gmra.mrb[12].mxu1 %v599_v21 }
 0x19d   : > { %1419 = vmatpush3.bf16.msra.mxu1 %v1532_v23 }
 0x19e   : > { %1412 = vmatprep.subr.bf16.mxu1 %v1533_v24 }
 0x1a1   : > { %1420 = vmatpush3.bf16.msra.mxu1 %v1533_v24 }
 0x257   : > { %v1359_v26 = vpop.f32.mrb[0].mxu1 }
 0x258   : > { %v714_v27 = vadd.f32 %v1359_v26, %v1220_v25  ;;  %v705_v28 = vpop.f32.mrb[1].mxu1 }
 0x259   : > { %v706_v29 = vadd.f32 %v1220_v25, %v705_v28  ;;  %v1360_v30 = vpop.f32.mrb[2].mxu1 }
 0x25a   : > { %v717_v31 = vadd.f32 %v1360_v30, %v1220_v25  ;;  %v708_v32 = vpop.f32.mrb[3].mxu1  ;;  %v770_v34 = vmax.f32 %v714_v27, 0.0 }
 0x25b   : > { %v709_v33 = vadd.f32 %v1220_v25, %v708_v32  ;;  %v768_v36 = vmax.f32 %v706_v29, 0.0 }
 0x25c   : > { %v771_v35 = vmax.f32 %v717_v31, 0.0 }
 0x25d   : > { %v769_v37 = vmax.f32 %v709_v33, 0.0 }
 0x25e   : > { %v785_v38 = vpack.c.bf16 %v771_v35, %v770_v34 }
 0x25f   : > { %v784_v39 = vpack.c.bf16 %v769_v37, %v768_v36  ;;  %v1363_v40 = vpop.f32.mrb[4].mxu1 }
 0x260   : > { %v730_v41 = vadd.f32 %v1363_v40, %v1220_v25  ;;  %v721_v42 = vpop.f32.mrb[5].mxu1 }
 0x261   : > { %v722_v43 = vadd.f32 %v1220_v25, %v721_v42  ;;  %v1364_v44 = vpop.f32.mrb[6].mxu1  ;;  %1389 = vmatprep.mubr.bf16.mxu0 %v784_v39 }
 0x262   : > { %v733_v45 = vadd.f32 %v1364_v44, %v1220_v25  ;;  %v724_v46 = vpop.f32.mrb[7].mxu1  ;;  %1390 = vmatmul.mubr.bf16.vlgmr.msra.gmra.mrb[16].mxu0 %v785_v38  ;;  %v774_v48 = vmax.f32 %v730_v41, 0.0 }
 0x263   : > { %v725_v47 = vadd.f32 %v1220_v25, %v724_v46  ;;  %v772_v50 = vmax.f32 %v722_v43, 0.0 }
 0x264   : > { %v775_v49 = vmax.f32 %v733_v45, 0.0 }
 0x265   : > { %v773_v51 = vmax.f32 %v725_v47, 0.0 }
 0x266   : > { %v787_v52 = vpack.c.bf16 %v775_v49, %v774_v48 }
 0x267   : > { %v786_v53 = vpack.c.bf16 %v773_v51, %v772_v50  ;;  %v1367_v54 = vpop.f32.mrb[8].mxu1 }
 0x268   : > { %v746_v55 = vadd.f32 %v1367_v54, %v1220_v25  ;;  %v737_v56 = vpop.f32.mrb[9].mxu1 }
 0x269   : > { %v738_v57 = vadd.f32 %v1220_v25, %v737_v56  ;;  %v1368_v58 = vpop.f32.mrb[10].mxu1  ;;  %1393 = vmatprep.mubr.bf16.mxu0 %v786_v53 }
 0x26a   : > { %v749_v59 = vadd.f32 %v1368_v58, %v1220_v25  ;;  %v740_v60 = vpop.f32.mrb[11].mxu1  ;;  %1394 = vmatmul.mubr.bf16.gmra.mrb[20].mxu0 %v787_v52  ;;  %v778_v62 = vmax.f32 %v746_v55, 0.0 }
 0x26b   : > { %v741_v61 = vadd.f32 %v1220_v25, %v740_v60  ;;  %v776_v0 = vmax.f32 %v738_v57, 0.0 }
 0x26c   : > { %v779_v63 = vmax.f32 %v749_v59, 0.0 }
 0x26d   : > { %v777_v1 = vmax.f32 %v741_v61, 0.0 }
 0x26e   : > { %v789_v2 = vpack.c.bf16 %v779_v63, %v778_v62 }
 0x26f   : > { %v788_v3 = vpack.c.bf16 %v777_v1, %v776_v0  ;;  %v1371_v4 = vpop.f32.mrb[12].mxu1 }
 0x270   : > { %v762_v5 = vadd.f32 %v1371_v4, %v1220_v25  ;;  %v753_v6 = vpop.f32.mrb[13].mxu1 }
 0x271   : > { %v754_v7 = vadd.f32 %v1220_v25, %v753_v6  ;;  %v1372_v8 = vpop.f32.mrb[14].mxu1  ;;  %1397 = vmatprep.mubr.bf16.mxu1 %v788_v3 }
 0x272   : > { %v765_v9 = vadd.f32 %v1372_v8, %v1220_v25  ;;  %v756_v10 = vpop.f32.mrb[15].mxu1  ;;  %1398 = vmatmul.mubr.bf16.vlgmr.msra.gmra.mrb[16].mxu1 %v789_v2  ;;  %v782_v12 = vmax.f32 %v762_v5, 0.0 }
 0x273   : > { %v757_v11 = vadd.f32 %v1220_v25, %v756_v10  ;;  %v780_v14 = vmax.f32 %v754_v7, 0.0 }
 0x274   : > { %v783_v13 = vmax.f32 %v765_v9, 0.0 }
 0x275   : > { %v781_v15 = vmax.f32 %v757_v11, 0.0 }
 0x276   : > { %v791_v16 = vpack.c.bf16 %v783_v13, %v782_v12 }
 0x277   : > { %v790_v17 = vpack.c.bf16 %v781_v15, %v780_v14 }
 0x279   : > { %1401 = vmatprep.mubr.bf16.mxu1 %v790_v17 }
 0x27a   : > { %1402 = vmatmul.mubr.bf16.gmra.mrb[20].mxu1 %v791_v16 }
 0x335   : > { %v1391_v19 = vpop.f32.mrb[16].mxu0 }
 0x336   : > { %v906_v20 = vadd.f32 %v1391_v19, %v2113_v18  ;;  %v897_v21 = vpop.f32.mrb[17].mxu0 }
 0x337   : > { %v898_v22 = vadd.f32 %v2113_v18, %v897_v21  ;;  %v1392_v23 = vpop.f32.mrb[18].mxu0 }
 0x338   : > { %v1240_v24 = vmul.f32 -1.442695, %v906_v20  ;;  %v909_v25 = vadd.f32 %v1392_v23, %v2113_v18  ;;  %v900_v26 = vpop.f32.mrb[19].mxu0 }
 0x339   : > { %v1238_v27 = vmul.f32 -1.442695, %v898_v22  ;;  %v901_v28 = vadd.f32 %v2113_v18, %v900_v26 }
 0x33a   : > { %1534 = vpow2.f32 %v1240_v24  ;;  %v1241_v29 = vmul.f32 -1.442695, %v909_v25 }
 0x33b   : > { %1536 = vpow2.f32 %v1238_v27  ;;  %v1239_v30 = vmul.f32 -1.442695, %v901_v28 }
 0x33c   : > { %1538 = vpow2.f32 %v1241_v29 }
 0x33d   : > { %1540 = vpow2.f32 %v1239_v30  ;;  %v1395_v31 = vpop.f32.mrb[20].mxu0 }
 0x33e   : > { %v922_v32 = vadd.f32 %v1395_v31, %v2113_v18  ;;  %v913_v33 = vpop.f32.mrb[21].mxu0 }
 0x33f   : > { %v914_v34 = vadd.f32 %v2113_v18, %v913_v33  ;;  %v1396_v35 = vpop.f32.mrb[22].mxu0 }
 0x340   : > { %v1244_v36 = vmul.f32 -1.442695, %v922_v32  ;;  %v925_v37 = vadd.f32 %v1396_v35, %v2113_v18  ;;  %v916_v38 = vpop.f32.mrb[23].mxu0 }
 0x341   : > { %v1242_v39 = vmul.f32 -1.442695, %v914_v34  ;;  %v917_v40 = vadd.f32 %v2113_v18, %v916_v38 }
 0x342   : > { %1542 = vpow2.f32 %v1244_v36  ;;  %v1245_v41 = vmul.f32 -1.442695, %v925_v37 }
 0x343   : > { %1544 = vpow2.f32 %v1242_v39  ;;  %v1243_v42 = vmul.f32 -1.442695, %v917_v40 }
 0x344   : > { %v1535_v43 = vpop.eup %1534  ;;  %1546 = vpow2.f32 %v1245_v41 }
 0x345   : > { %v1537_v44 = vpop.eup %1536  ;;  %v1010_v45 = vadd.f32 1.0, %v1535_v43  ;;  %1548 = vpow2.f32 %v1243_v42  ;;  %v1399_v46 = vpop.f32.mrb[16].mxu1 }
 0x346   : > { %v1539_v47 = vpop.eup %1538  ;;  %v1008_v48 = vadd.f32 1.0, %v1537_v44  ;;  %v938_v49 = vadd.f32 %v1399_v46, %v2113_v18  ;;  %v929_v50 = vpop.f32.mrb[17].mxu1 }
 0x347   : > { %v1541_v51 = vpop.eup %1540  ;;  %1550 = vrcp.f32 %v1010_v45  ;;  %v1011_v52 = vadd.f32 1.0, %v1539_v47  ;;  %v930_v53 = vadd.f32 %v2113_v18, %v929_v50  ;;  %v1400_v54 = vpop.f32.mrb[18].mxu1 }
 0x348   : > { %1552 = vrcp.f32 %v1008_v48  ;;  %v1009_v55 = vadd.f32 1.0, %v1541_v51  ;;  %v1248_v56 = vmul.f32 -1.442695, %v938_v49  ;;  %v941_v57 = vadd.f32 %v1400_v54, %v2113_v18  ;;  %v932_v58 = vpop.f32.mrb[19].mxu1 }
 0x349   : > { %1554 = vrcp.f32 %v1011_v52  ;;  %v1246_v59 = vmul.f32 -1.442695, %v930_v53  ;;  %v933_v60 = vadd.f32 %v2113_v18, %v932_v58 }
 0x34a   : > { %1556 = vrcp.f32 %v1009_v55  ;;  %v1249_v61 = vmul.f32 -1.442695, %v941_v57 }
 0x34b   : > { %1558 = vpow2.f32 %v1248_v56  ;;  %v1247_v62 = vmul.f32 -1.442695, %v933_v60 }
 0x34c   : > { %v1543_v63 = vpop.eup %1542  ;;  %1560 = vpow2.f32 %v1246_v59 }
 0x34d   : > { %v1545_v0 = vpop.eup %1544  ;;  %v1014_v1 = vadd.f32 1.0, %v1543_v63  ;;  %1562 = vpow2.f32 %v1249_v61  ;;  %v1403_v2 = vpop.f32.mrb[20].mxu1 }
 0x34e   : > { %v1547_v3 = vpop.eup %1546  ;;  %v1012_v4 = vadd.f32 1.0, %v1545_v0  ;;  %1564 = vpow2.f32 %v1247_v62  ;;  %v954_v5 = vadd.f32 %v1403_v2, %v2113_v18  ;;  %v945_v6 = vpop.f32.mrb[21].mxu1 }
 0x34f   : > { %v1549_v7 = vpop.eup %1548  ;;  %1566 = vrcp.f32 %v1014_v1  ;;  %v1015_v8 = vadd.f32 1.0, %v1547_v3  ;;  %v946_v9 = vadd.f32 %v2113_v18, %v945_v6  ;;  %v1404_v10 = vpop.f32.mrb[22].mxu1 }
 0x350   : > { %1568 = vrcp.f32 %v1012_v4  ;;  %v1013_v11 = vadd.f32 1.0, %v1549_v7  ;;  %v1252_v12 = vmul.f32 -1.442695, %v954_v5  ;;  %v957_v13 = vadd.f32 %v1404_v10, %v2113_v18  ;;  %v948_v14 = vpop.f32.mrb[23].mxu1 }
 0x351   : > { %v1551_v15 = vpop.eup %1550  ;;  %1570 = vrcp.f32 %v1015_v8  ;;  %v1250_v16 = vmul.f32 -1.442695, %v946_v9  ;;  %v949_v17 = vadd.f32 %v2113_v18, %v948_v14 }
 0x352   : > { %v1553_v19 = vpop.eup %1552  ;;  %1058 = vst [vmem:[%s2132_s12 + $0x10] sm:$0xff] %v1551_v15  ;;  %1572 = vrcp.f32 %v1013_v11  ;;  %v1253_v20 = vmul.f32 -1.442695, %v957_v13 }
 0x353   : > { %v1555_v21 = vpop.eup %1554  ;;  %1056 = vst [vmem:[%s2132_s12] sm:$0xff] %v1553_v19  ;;  %1574 = vpow2.f32 %v1252_v12  ;;  %v1251_v22 = vmul.f32 -1.442695, %v949_v17 }
 0x354   : > { %v1557_v23 = vpop.eup %1556  ;;  %1059 = vst [vmem:[%s2132_s12 + $0x18] sm:$0xff] %v1555_v21  ;;  %1576 = vpow2.f32 %v1250_v16 }
 0x355   : > { %v1559_v24 = vpop.eup %1558  ;;  %1057 = vst [vmem:[%s2132_s12 + $0x8] sm:$0xff] %v1557_v23  ;;  %1578 = vpow2.f32 %v1253_v20 }
 0x356   : > { %v1561_v18 = vpop.eup %1560  ;;  %v1018_v25 = vadd.f32 1.0, %v1559_v24  ;;  %1580 = vpow2.f32 %v1251_v22 }
 0x357   : > { %v1563_v26 = vpop.eup %1562  ;;  %v1016_v27 = vadd.f32 1.0, %v1561_v18 }
 0x358   : > { %v1565_v28 = vpop.eup %1564  ;;  %1582 = vrcp.f32 %v1018_v25  ;;  %v1019_v29 = vadd.f32 1.0, %v1563_v26 }
 0x359   : > { %v1567_v30 = vpop.eup %1566  ;;  %1584 = vrcp.f32 %v1016_v27  ;;  %v1017_v31 = vadd.f32 1.0, %v1565_v28 }
 0x35a   : > { %v1569_v32 = vpop.eup %1568  ;;  %1062 = vst [vmem:[%s2132_s12 + $0x30] sm:$0xff] %v1567_v30  ;;  %1586 = vrcp.f32 %v1019_v29 }
 0x35b   : > { %v1571_v33 = vpop.eup %1570  ;;  %1060 = vst [vmem:[%s2132_s12 + $0x20] sm:$0xff] %v1569_v32  ;;  %1588 = vrcp.f32 %v1017_v31 }
 0x35c   : > { %v1573_v34 = vpop.eup %1572  ;;  %1063 = vst [vmem:[%s2132_s12 + $0x38] sm:$0xff] %v1571_v33 }
 0x35d   : > { %v1575_v35 = vpop.eup %1574  ;;  %1061 = vst [vmem:[%s2132_s12 + $0x28] sm:$0xff] %v1573_v34 }
 0x35e   : > { %v1577_v36 = vpop.eup %1576  ;;  %v1022_v37 = vadd.f32 1.0, %v1575_v35 }
 0x35f   : > { %v1579_v38 = vpop.eup %1578  ;;  %v1020_v39 = vadd.f32 1.0, %v1577_v36 }
 0x360   : > { %v1581_v40 = vpop.eup %1580  ;;  %1590 = vrcp.f32 %v1022_v37  ;;  %v1023_v41 = vadd.f32 1.0, %v1579_v38 }
 0x361   : > { %1592 = vrcp.f32 %v1020_v39  ;;  %v1021_v42 = vadd.f32 1.0, %v1581_v40 }
 0x362   : > { %v1583_v43 = vpop.eup %1582  ;;  %1594 = vrcp.f32 %v1023_v41 }
 0x363   : > { %v1585_v44 = vpop.eup %1584  ;;  %1066 = vst [vmem:[%s2132_s12 + $0x50] sm:$0xff] %v1583_v43  ;;  %1596 = vrcp.f32 %v1021_v42 }
 0x364   : > { %v1587_v45 = vpop.eup %1586  ;;  %1064 = vst [vmem:[%s2132_s12 + $0x40] sm:$0xff] %v1585_v44 }
 0x365   : > { %v1589_v46 = vpop.eup %1588  ;;  %1067 = vst [vmem:[%s2132_s12 + $0x58] sm:$0xff] %v1587_v45 }
 0x366   : > { %1065 = vst [vmem:[%s2132_s12 + $0x48] sm:$0xff] %v1589_v46 }
 0x36a   : > { %v1591_v47 = vpop.eup %1590 }
 0x36b   : > { %v1593_v48 = vpop.eup %1592  ;;  %1070 = vst [vmem:[%s2132_s12 + $0x70] sm:$0xff] %v1591_v47 }
 0x36c   : > { %v1595_v49 = vpop.eup %1594  ;;  %1068 = vst [vmem:[%s2132_s12 + $0x60] sm:$0xff] %v1593_v48 }
 0x36d   : > { %v1597_v50 = vpop.eup %1596  ;;  %1071 = vst [vmem:[%s2132_s12 + $0x78] sm:$0xff] %v1595_v49 }
 0x36e   : > { %1069 = vst [vmem:[%s2132_s12 + $0x68] sm:$0xff] %v1597_v50 }
 0x36f   : > { %1725 = shalt.err (!%p1722_p4)
}
 0x370   : > { %s1726_s15 = scalar_lea.hbm %s2152_s11, 2048  ;;  %s1730_s8 = scalar_lea.hbm %s2208_s7, 4096 }
 0x371   : > { %p1727_p9 = scmp.ne.s32.totalorder %s2152_s11, %s1726_s15  ;;  %p1731_p8 = scmp.lt.u32.totalorder %s2152_s11, %s2208_s7 }
 0x372   : > { %p1732_p13 = scmp.lt.u32.totalorder %s1730_s8, %s1726_s15  ;;  %p1734_p10 = scmp.lt.u32.totalorder %s1726_s15, %s2152_s11 }
 0x373   : > { %p1728_p0 = pnand %p1727_p9, %p1991_p5 }
 0x374   : > { %p1733_p6 = por %p1732_p13, %p1731_p8 }
 0x375   : > { %p1729_p11 = pneg %p1728_p0 }
 0x376   : > { %p1735_p3 = por %p1734_p10, %p1733_p6 }
 0x378   : > { %p1736_p7 = pnand %p1735_p3, %p1729_p11 }
 0x37a   : > { %1739 = shalt.err (!%p1736_p7)
}
 0x37b   : > { %s1795_s29 = smov 128   ;;  %s1796_s23 = smov 8  }
 0x37c   : > { %1435 = dma.vmem_to_hbm [thread:$0]  (%p1991_p5), %s2154_s16, 2048, %s2152_s11, %s1073_s28, %s1795_s29, %s1795_s29, %s1796_s23  }
 0x37d PF: > { %s2228_s20 = sld [smem:[#allocation15_spill]]  ;;  %s1101_s30 = sand.u32 1, %s1774_s24  }
 0x37e   : > { %p2230_p1 = scmp.ge.s32.totalorder %s1786_s27, 2  ;;  %s1102_s9 = scalar_lea.sflag [#allocation4], %s1101_s30 }
 0x383   : > { %p2229_p12 = scmp.ne.s32.totalorder %s2228_s20, 0 }
 0x385   : > { %p1452_p2 = pnand %p2230_p1, %p2229_p12 }
 0x387   : > { %1769 = dma.done.wait (!%p1452_p2), %s1102_s9, 2048  }
 0x388   : > { %1771 = vsyncadd (!%p1452_p2), %s1102_s9, 4294965248  ;;  %p22_p4 = scmp.ge.s32.totalorder %s1977_s22, 4   ;;  %s2231_s24 = smov %s1778_s25 }
 0x389   : > { %s2232_s25 = smov %s1782_s26  ;;  %s2233_s26 = smov %s1987_s18 }
 0x38a   : > { %s2234_s27 = smov %s1977_s22  ;;  %24 = sbr.rel (!%p22_p4) target bundleno = 7 (0x7), region = 105 }
 0x391   :  { %1107 = vsyncpa [#allocation3], 1 }
 0x392   :  { %1109 = vsyncpa [#allocation3 + $0x1], 1 }
 0x393   :  { %1110 = vsyncpa [#allocation6], 1 }
 0x394   :  { %1111 = vsyncpa [#allocation9], 1 }
 0x395   :  { %1112 = vsyncpa [#allocation4], 1 }
 0x396   :  { %1114 = vsyncpa [#allocation4 + $0x1], 1 }

</bundles_post_ra>
